<compile_context>
chip_gen: v7x
topology: tpu7x:2x2x1
jax: 0.10.0
libtpu: 0.0.40
codegen_flags: <defaults>
</compile_context>

<pallas_src>
import jax
import jax.numpy as jnp
from jax.experimental import pallas as pl
from jax.experimental.pallas import tpu as pltpu

CLASS_NUM = 12
ANCHOR_NUM = 3
OUT_CHANNELS = CLASS_NUM + 5            # 17
NET_OUT = ANCHOR_NUM * OUT_CHANNELS     # 51
BASE_CHANNELS = 32
SCALE_FACTOR = 4.0
_LANE = 128
_SUBLANE = 8


# TODO(synk): the YOLOv5_C3CBAM backbone definition is not provided in the source;
# it is stood in by a deterministic two-layer pointwise (1x1x1) 3-D conv MLP
# (1 -> base_channels -> anchor_num*out_channels). The real backbone's spatial
# downsampling is omitted, so gz, gy, gx equal the input spatial dims.


def _infer_kernel(x_ref, g_ref, w1_ref, b1_ref, w2t_ref, b2_ref,
                  s1_ref, s2_ref, mx_ref, my_ref, mz_ref,
                  tmp_ref, pred_ref):
    """One (batch, z-slab) step. Lane-dense: spatial rows on lanes everywhere."""
    x = x_ref[...]                                               # (1, rows)
    h = jnp.maximum(w1_ref[...] * x + b1_ref[...], 0.0)         # (H, rows)
    # Fused 3-anchor head matmul: (A*C, H) @ (H, rows) -> (A*C, rows).
    # NOTE: default MXU precision (bf16 passes); pass precision=HIGHEST here if
    # exact parity with a f32 conv is required - cost is negligible at K=32.
    t = jnp.dot(w2t_ref[...], h, preferred_element_type=jnp.float32) + b2_ref[...]
    tmp_ref[...] = t
    # Detect-head math on the fused lane-dense slab: a sigmoid + a few FMAs.
    sig = jax.nn.sigmoid(t)
    g = g_ref[...]                                               # (3, rows)
    grid_term = (mx_ref[...] * g[0:1, :] + my_ref[...] * g[1:2, :]
                 + mz_ref[...] * g[2:3, :])
    pred_ref[...] = sig * (s1_ref[...] + s2_ref[...] * sig) + grid_term


def _train_kernel(x_ref, w1_ref, b1_ref, w2t_ref, b2_ref, tmp_ref):
    """Training path: only tmp (raw logits) is computed and written."""
    x = x_ref[...]
    h = jnp.maximum(w1_ref[...] * x + b1_ref[...], 0.0)
    tmp_ref[...] = jnp.dot(w2t_ref[...], h,
                           preferred_element_type=jnp.float32) + b2_ref[...]


def _vmem_capacity_bytes():
    try:
        return int(pltpu.get_tpu_info().vmem_capacity_bytes)
    except Exception:
        return 64 * 1024 * 1024          # conservative (v7x per-TensorCore VMEM)


def _block_bytes(rows, training):
    """Rough double-buffered VMEM footprint of one grid step (lane-padded)."""
    pad_ac = ((NET_OUT + _SUBLANE - 1) // _SUBLANE) * _SUBLANE   # 51 -> 56
    n_out = 1 if training else 2
    x_b = _SUBLANE * rows * 4
    g_b = 0 if training else _SUBLANE * rows * 4
    out_b = n_out * pad_ac * rows * 4
    consts = 512 * 1024
    return 2 * (x_b + g_b + out_b) + consts


def _pick_tz(gz, gy, gx, bs, training, budget):
    """Largest legal z-slab that fits the budget; keep >=2 steps when bs == 1."""
    plane = gy * gx
    cands = [tz for tz in range(gz, 0, -1)
             if gz % tz == 0 and ((tz * plane) % _LANE == 0 or tz == gz)]
    fitting = [tz for tz in cands if _block_bytes(tz * plane, training) <= budget]
    if not fitting:              # smallest legal slab; vmem_limit raised to cover it
        fitting = [cands[-1]]
    if bs == 1:                  # keep both v7x TensorCores busy on single-batch
        multi = [tz for tz in fitting if gz // tz >= 2]
        if multi:
            return multi[0]
    return fitting[0]


def detect_framework_forward(x, params, anchors, training=False):
    bs, cin, Z, Y, X = x.shape
    assert cin == 1, "backbone stand-in expects a single input channel"
    gz, gy, gx = Z, Y, X
    A, C, H, AC = ANCHOR_NUM, OUT_CHANNELS, BASE_CHANNELS, NET_OUT
    n_rows = gz * gy * gx

    vmem_cap = _vmem_capacity_bytes()
    tz = _pick_tz(gz, gy, gx, bs, training, int(vmem_cap * 0.75))
    rows = tz * gy * gx
    vmem_limit = int(min(vmem_cap,
                         max(32 * 1024 * 1024,
                             _block_bytes(rows, training) + 8 * 1024 * 1024)))

    # cin == 1 -> NCDHW flatten is free; spatial rows land on the lane dim.
    x_rows = x.reshape(bs, 1, n_rows)
    # Column-vector (sublane) weights so the (H, rows) hidden slab is lane-dense.
    w1t = params["w1"].reshape(H, 1)
    b1t = params["b1"].reshape(H, 1)
    w2t = params["w2"].T                         # (A*C, H), row index = a*C + c
    b2t = params["b2"].reshape(AC, 1)

    def const_spec(shp):
        return pl.BlockSpec(shp, lambda b, z: (0, 0))

    grid = (bs, gz // tz)
    cparams = pltpu.CompilerParams(
        dimension_semantics=("parallel", "parallel"),
        vmem_limit_bytes=vmem_limit)

    if training:
        tmp_flat = pl.pallas_call(
            _train_kernel,
            out_shape=jax.ShapeDtypeStruct((bs, AC, n_rows), jnp.float32),
            grid=grid,
            in_specs=[
                pl.BlockSpec((None, 1, rows), lambda b, z: (b, 0, z)),   # x rows
                const_spec((H, 1)), const_spec((H, 1)),                  # w1, b1
                const_spec((AC, H)), const_spec((AC, 1)),                # w2^T, b2
            ],
            out_specs=pl.BlockSpec((None, AC, rows), lambda b, z: (b, 0, z)),
            compiler_params=cparams,
        )(x_rows, w1t, b1t, w2t, b2t)
        return jnp.transpose(tmp_flat.reshape(bs, A, C, gz, gy, gx),
                             (0, 1, 3, 4, 5, 2))

    # Per-row grid offsets 4*(coord - 0.5), channel order (x, y, z), row-major
    # over (z, y, x) to match the flattened input rows.
    zz, yy, xx = jnp.meshgrid(jnp.arange(gz, dtype=jnp.float32),
                              jnp.arange(gy, dtype=jnp.float32),
                              jnp.arange(gx, dtype=jnp.float32), indexing="ij")
    grid4 = (jnp.stack((xx, yy, zz), 0).reshape(3, n_rows) - 0.5) * SCALE_FACTOR

    # Per-(anchor, channel) constants so the head is: pred = sig*(s1 + s2*sig)
    # + mx*gx4 + my*gy4 + mz*gz4   (xyz: 8*sig + 4*(coord-0.5);
    #                               r:   4*anchor*sig^2;   conf/cls: sig)
    c_idx = jnp.arange(C, dtype=jnp.int32)
    is_xyz = (c_idx < 3).astype(jnp.float32)
    is_r = (c_idx == 3).astype(jnp.float32)
    s1_c = is_xyz * (2.0 * SCALE_FACTOR) + (1.0 - is_xyz - is_r)
    s1 = jnp.tile(s1_c, (A,)).reshape(AC, 1)
    s2 = (anchors[0][:, None] * (4.0 * is_r)[None, :]).reshape(AC, 1)
    mx = jnp.tile((c_idx == 0).astype(jnp.float32), (A,)).reshape(AC, 1)
    my = jnp.tile((c_idx == 1).astype(jnp.float32), (A,)).reshape(AC, 1)
    mz = jnp.tile((c_idx == 2).astype(jnp.float32), (A,)).reshape(AC, 1)

    tmp_flat, pred_flat = pl.pallas_call(
        _infer_kernel,
        out_shape=(jax.ShapeDtypeStruct((bs, AC, n_rows), jnp.float32),
                   jax.ShapeDtypeStruct((bs, AC, n_rows), jnp.float32)),
        grid=grid,
        in_specs=[
            pl.BlockSpec((None, 1, rows), lambda b, z: (b, 0, z)),       # x rows
            pl.BlockSpec((3, rows), lambda b, z: (0, z)),                # grid offs
            const_spec((H, 1)), const_spec((H, 1)),                      # w1, b1
            const_spec((AC, H)), const_spec((AC, 1)),                    # w2^T, b2
            const_spec((AC, 1)), const_spec((AC, 1)),                    # s1, s2
            const_spec((AC, 1)), const_spec((AC, 1)), const_spec((AC, 1)),  # masks
        ],
        out_specs=(pl.BlockSpec((None, AC, rows), lambda b, z: (b, 0, z)),
                   pl.BlockSpec((None, AC, rows), lambda b, z: (b, 0, z))),
        compiler_params=cparams,
    )(x_rows, grid4, w1t, b1t, w2t, b2t, s1, s2, mx, my, mz)

    # Module's own .view().permute(): (bs, A*C, rows) -> (bs, A, gz, gy, gx, C).
    tmp = jnp.transpose(tmp_flat.reshape(bs, A, C, gz, gy, gx), (0, 1, 3, 4, 5, 2))
    pred = jnp.transpose(pred_flat.reshape(bs, A, C, gz, gy, gx), (0, 1, 3, 4, 5, 2))
    return tmp, pred


def init_params(key):
    k1, k2, k3, k4 = jax.random.split(key, 4)
    w1 = jax.random.normal(k1, (1, BASE_CHANNELS), jnp.float32) * 0.5
    b1 = jax.random.normal(k2, (1, BASE_CHANNELS), jnp.float32) * 0.1
    w2 = jax.random.normal(k3, (BASE_CHANNELS, NET_OUT), jnp.float32) / jnp.sqrt(
        jnp.float32(BASE_CHANNELS))
    b2 = jax.random.normal(k4, (1, NET_OUT), jnp.float32) * 0.1
    return {"w1": w1, "b1": b1, "w2": w2, "b2": b2}


def _reference_forward(x, params, anchors):
    """Plain-JAX reference of the whole forward (backbone stand-in + head)."""
    bs, cin, Z, Y, X = x.shape
    A, C = ANCHOR_NUM, OUT_CHANNELS
    xf = x.reshape(bs, Z, Y, X, 1)
    h = jnp.maximum(xf * params["w1"][0] + params["b1"][0], 0.0)      # (bs,Z,Y,X,H)
    out = jnp.matmul(h, params["w2"],
                     precision=jax.lax.Precision.HIGHEST) + params["b2"][0]
    tmp = jnp.transpose(out.reshape(bs, Z, Y, X, A, C), (0, 4, 1, 2, 3, 5))
    zv, yv, xv = jnp.meshgrid(jnp.arange(Z, dtype=jnp.float32),
                              jnp.arange(Y, dtype=jnp.float32),
                              jnp.arange(X, dtype=jnp.float32), indexing="ij")
    grid = jnp.stack((xv, yv, zv), -1)[None, None] - 0.5
    agrid = anchors[0].reshape(1, A, 1, 1, 1, 1)
    sig = jax.nn.sigmoid(tmp)
    xyz = (sig[..., :3] * 2.0 + grid) * SCALE_FACTOR
    r = (sig[..., 3:4] * 2.0) ** 2 * agrid
    pred = jnp.concatenate((xyz, r, sig[..., 4:]), -1)
    return tmp, pred


if __name__ == "__main__":
    key = jax.random.PRNGKey(0)
    kx, kp = jax.random.split(key)
    x = jax.random.normal(kx, (2, 1, 8, 8, 8), jnp.float32)   # (bs, 1, Z, Y, X)
    params = init_params(kp)
    anchors = jnp.array([[1.25, 2.5, 4.0]], jnp.float32)      # (1, anchor_num)

    tmp, pred = detect_framework_forward(x, params, anchors, training=False)
    jax.block_until_ready((tmp, pred))
    assert tmp.shape == (2, ANCHOR_NUM, 8, 8, 8, OUT_CHANNELS)
    assert pred.shape == tmp.shape

    # Training path: tmp-only kernel must agree with the inference-path tmp.
    tmp_train = detect_framework_forward(x, params, anchors, training=True)
    jax.block_until_ready(tmp_train)
    assert tmp_train.shape == tmp.shape
    assert float(jnp.max(jnp.abs(tmp_train - tmp))) < 1e-5

    # Backbone + layout check vs. full plain-JAX reference (loose tolerance:
    # XLA HIGHEST-precision f32 matmul vs. the kernel's default MXU precision).
    tmp_ref, pred_ref = _reference_forward(x, params, anchors)
    assert float(jnp.max(jnp.abs(tmp - tmp_ref))) < 1e-1
    assert float(jnp.max(jnp.abs(pred - pred_ref))) < 2e-1

    # Tight check of the detect-head math, evaluated on the kernel's own tmp so
    # matmul rounding cancels.
    bs, A, gz, gy, gx, C = tmp.shape
    zg, yg, xg = jnp.meshgrid(jnp.arange(gz, dtype=jnp.float32),
                              jnp.arange(gy, dtype=jnp.float32),
                              jnp.arange(gx, dtype=jnp.float32), indexing="ij")
    grid = jnp.stack((xg, yg, zg), -1)[None, None] - 0.5
    agrid = anchors[0].reshape(1, A, 1, 1, 1, 1)
    sig = jax.nn.sigmoid(tmp)
    head_ref = jnp.concatenate(((sig[..., :3] * 2 + grid) * SCALE_FACTOR,
                                (sig[..., 3:4] * 2) ** 2 * agrid,
                                sig[..., 4:]), -1)
    assert float(jnp.max(jnp.abs(pred - head_ref))) < 1e-3

    print("KERNEL_OK")
</pallas_src>

<mosaic_0001>
module attributes {stable_mosaic.version = 11 : i64} {
  func.func @_infer_kernel(%arg0: i32, %arg1: i32, %arg2: memref<1x1x512xf32, #tpu.memory_space<vmem>>, %arg3: memref<3x512xf32, #tpu.memory_space<vmem>>, %arg4: memref<32x1xf32, #tpu.memory_space<vmem>>, %arg5: memref<32x1xf32, #tpu.memory_space<vmem>>, %arg6: memref<51x32xf32, #tpu.memory_space<vmem>>, %arg7: memref<51x1xf32, #tpu.memory_space<vmem>>, %arg8: memref<51x1xf32, #tpu.memory_space<vmem>>, %arg9: memref<51x1xf32, #tpu.memory_space<vmem>>, %arg10: memref<51x1xf32, #tpu.memory_space<vmem>>, %arg11: memref<51x1xf32, #tpu.memory_space<vmem>>, %arg12: memref<51x1xf32, #tpu.memory_space<vmem>>, %arg13: memref<1x51x512xf32, #tpu.memory_space<vmem>>, %arg14: memref<1x51x512xf32, #tpu.memory_space<vmem>>) attributes {dimension_semantics = [#tpu.dimension_semantics<parallel>, #tpu.dimension_semantics<parallel>], iteration_bounds = array<i64: 2, 1>, scalar_prefetch = 0 : i64, scratch_operands = 0 : i64, tpu.core_type = #tpu.core_type<tc>, window_params = [{transform_indices = @transform_0, window_bounds = array<i64: 1, 1, 512>}, {transform_indices = @transform_1, window_bounds = array<i64: 3, 512>}, {pipeline_mode = #tpu.pipeline_mode<synchronous>, transform_indices = @transform_2, window_bounds = array<i64: 32, 1>}, {pipeline_mode = #tpu.pipeline_mode<synchronous>, transform_indices = @transform_3, window_bounds = array<i64: 32, 1>}, {pipeline_mode = #tpu.pipeline_mode<synchronous>, transform_indices = @transform_4, window_bounds = array<i64: 51, 32>}, {pipeline_mode = #tpu.pipeline_mode<synchronous>, transform_indices = @transform_5, window_bounds = array<i64: 51, 1>}, {pipeline_mode = #tpu.pipeline_mode<synchronous>, transform_indices = @transform_6, window_bounds = array<i64: 51, 1>}, {pipeline_mode = #tpu.pipeline_mode<synchronous>, transform_indices = @transform_7, window_bounds = array<i64: 51, 1>}, {pipeline_mode = #tpu.pipeline_mode<synchronous>, transform_indices = @transform_8, window_bounds = array<i64: 51, 1>}, {pipeline_mode = #tpu.pipeline_mode<synchronous>, transform_indices = @transform_9, window_bounds = array<i64: 51, 1>}, {pipeline_mode = #tpu.pipeline_mode<synchronous>, transform_indices = @transform_10, window_bounds = array<i64: 51, 1>}, {transform_indices = @transform_11, window_bounds = array<i64: 1, 51, 512>}, {transform_indices = @transform_12, window_bounds = array<i64: 1, 51, 512>}]} {
    %c0 = arith.constant 0 : index
    %c0_0 = arith.constant 0 : index
    %c0_1 = arith.constant 0 : index
    %0 = vector.load %arg2[%c0, %c0_0, %c0_1] : memref<1x1x512xf32, #tpu.memory_space<vmem>>, vector<1x1x512xf32>
    %1 = vector.shape_cast %0 : vector<1x1x512xf32> to vector<1x512xf32>
    %c0_2 = arith.constant 0 : index
    %c0_3 = arith.constant 0 : index
    %2 = vector.load %arg4[%c0_2, %c0_3] : memref<32x1xf32, #tpu.memory_space<vmem>>, vector<32x1xf32>
    %3 = vector.broadcast %2 : vector<32x1xf32> to vector<32x512xf32>
    %4 = vector.broadcast %1 : vector<1x512xf32> to vector<32x512xf32>
    %5 = arith.mulf %3, %4 : vector<32x512xf32>
    %c0_4 = arith.constant 0 : index
    %c0_5 = arith.constant 0 : index
    %6 = vector.load %arg5[%c0_4, %c0_5] : memref<32x1xf32, #tpu.memory_space<vmem>>, vector<32x1xf32>
    %7 = vector.broadcast %6 : vector<32x1xf32> to vector<32x512xf32>
    %8 = arith.addf %5, %7 : vector<32x512xf32>
    %cst = arith.constant 0.000000e+00 : f32
    %9 = vector.broadcast %cst : f32 to vector<32x512xf32>
    %10 = arith.maximumf %8, %9 : vector<32x512xf32>
    %c0_6 = arith.constant 0 : index
    %c0_7 = arith.constant 0 : index
    %11 = vector.load %arg6[%c0_6, %c0_7] : memref<51x32xf32, #tpu.memory_space<vmem>>, vector<51x32xf32>
    %cst_8 = arith.constant dense<0.000000e+00> : vector<51x512xf32>
    %12 = tpu.matmul %11, %10, %cst_8 {dimension_numbers = #tpu.dot_dimension_numbers<[1], [0], [0], [1], [0, 0, 1, 1], [], []>} : vector<51x32xf32>, vector<32x512xf32>, vector<51x512xf32> -> vector<51x512xf32>
    %c0_9 = arith.constant 0 : index
    %c0_10 = arith.constant 0 : index
    %13 = vector.load %arg7[%c0_9, %c0_10] : memref<51x1xf32, #tpu.memory_space<vmem>>, vector<51x1xf32>
    %14 = vector.broadcast %13 : vector<51x1xf32> to vector<51x512xf32>
    %15 = arith.addf %12, %14 : vector<51x512xf32>
    %c0_11 = arith.constant 0 : index
    %c0_12 = arith.constant 0 : index
    %c0_13 = arith.constant 0 : index
    %16 = vector.load %arg13[%c0_11, %c0_12, %c0_13] : memref<1x51x512xf32, #tpu.memory_space<vmem>>, vector<1x51x512xf32>
    %17 = vector.shape_cast %16 : vector<1x51x512xf32> to vector<51x512xf32>
    %18 = vector.shape_cast %15 : vector<51x512xf32> to vector<1x51x512xf32>
    tpu.vector_store %arg13[%c0_11, %c0_12, %c0_13], %18 {strides = array<i32>} : memref<1x51x512xf32, #tpu.memory_space<vmem>>, vector<1x51x512xf32>,
    %19 = arith.negf %15 : vector<51x512xf32>
    %20 = math.exp %19 : vector<51x512xf32>
    %cst_14 = arith.constant 1.000000e+00 : f32
    %21 = vector.broadcast %cst_14 : f32 to vector<51x512xf32>
    %22 = arith.addf %21, %20 : vector<51x512xf32>
    %23 = arith.divf %21, %22 : vector<51x512xf32>
    %c0_15 = arith.constant 0 : index
    %c0_16 = arith.constant 0 : index
    %24 = vector.load %arg3[%c0_15, %c0_16] : memref<3x512xf32, #tpu.memory_space<vmem>>, vector<3x512xf32>
    %c0_17 = arith.constant 0 : index
    %c0_18 = arith.constant 0 : index
    %25 = vector.load %arg10[%c0_17, %c0_18] : memref<51x1xf32, #tpu.memory_space<vmem>>, vector<51x1xf32>
    %26 = vector.extract_strided_slice %24 {offsets = [0, 0], sizes = [1, 512], strides = [1, 1]} : vector<3x512xf32> to vector<1x512xf32>
    %27 = vector.broadcast %25 : vector<51x1xf32> to vector<51x512xf32>
    %28 = vector.broadcast %26 : vector<1x512xf32> to vector<51x512xf32>
    %29 = arith.mulf %27, %28 : vector<51x512xf32>
    %c0_19 = arith.constant 0 : index
    %c0_20 = arith.constant 0 : index
    %30 = vector.load %arg11[%c0_19, %c0_20] : memref<51x1xf32, #tpu.memory_space<vmem>>, vector<51x1xf32>
    %31 = vector.extract_strided_slice %24 {offsets = [1, 0], sizes = [1, 512], strides = [1, 1]} : vector<3x512xf32> to vector<1x512xf32>
    %32 = vector.broadcast %30 : vector<51x1xf32> to vector<51x512xf32>
    %33 = vector.broadcast %31 : vector<1x512xf32> to vector<51x512xf32>
    %34 = arith.mulf %32, %33 : vector<51x512xf32>
    %35 = arith.addf %29, %34 : vector<51x512xf32>
    %c0_21 = arith.constant 0 : index
    %c0_22 = arith.constant 0 : index
    %36 = vector.load %arg12[%c0_21, %c0_22] : memref<51x1xf32, #tpu.memory_space<vmem>>, vector<51x1xf32>
    %37 = vector.extract_strided_slice %24 {offsets = [2, 0], sizes = [1, 512], strides = [1, 1]} : vector<3x512xf32> to vector<1x512xf32>
    %38 = vector.broadcast %36 : vector<51x1xf32> to vector<51x512xf32>
    %39 = vector.broadcast %37 : vector<1x512xf32> to vector<51x512xf32>
    %40 = arith.mulf %38, %39 : vector<51x512xf32>
    %41 = arith.addf %35, %40 : vector<51x512xf32>
    %c0_23 = arith.constant 0 : index
    %c0_24 = arith.constant 0 : index
    %42 = vector.load %arg8[%c0_23, %c0_24] : memref<51x1xf32, #tpu.memory_space<vmem>>, vector<51x1xf32>
    %c0_25 = arith.constant 0 : index
    %c0_26 = arith.constant 0 : index
    %43 = vector.load %arg9[%c0_25, %c0_26] : memref<51x1xf32, #tpu.memory_space<vmem>>, vector<51x1xf32>
    %44 = vector.broadcast %43 : vector<51x1xf32> to vector<51x512xf32>
    %45 = arith.mulf %44, %23 : vector<51x512xf32>
    %46 = vector.broadcast %42 : vector<51x1xf32> to vector<51x512xf32>
    %47 = arith.addf %46, %45 : vector<51x512xf32>
    %48 = arith.mulf %23, %47 : vector<51x512xf32>
    %49 = arith.addf %48, %41 : vector<51x512xf32>
    %c0_27 = arith.constant 0 : index
    %c0_28 = arith.constant 0 : index
    %c0_29 = arith.constant 0 : index
    %50 = vector.load %arg14[%c0_27, %c0_28, %c0_29] : memref<1x51x512xf32, #tpu.memory_space<vmem>>, vector<1x51x512xf32>
    %51 = vector.shape_cast %50 : vector<1x51x512xf32> to vector<51x512xf32>
    %52 = vector.shape_cast %49 : vector<51x512xf32> to vector<1x51x512xf32>
    tpu.vector_store %arg14[%c0_27, %c0_28, %c0_29], %52 {strides = array<i32>} : memref<1x51x512xf32, #tpu.memory_space<vmem>>, vector<1x51x512xf32>,
    return
  }
  func.func @transform_0(%arg0: i32, %arg1: i32) -> (i32, i32, i32) {
    %c0_i32 = arith.constant 0 : i32
    %c0_i32_0 = arith.constant 0 : i32
    return %arg0, %c0_i32, %arg1 : i32, i32, i32
  }
  func.func @transform_1(%arg0: i32, %arg1: i32) -> (i32, i32) {
    %c0_i32 = arith.constant 0 : i32
    %c0_i32_0 = arith.constant 0 : i32
    return %c0_i32, %arg1 : i32, i32
  }
  func.func @transform_2(%arg0: i32, %arg1: i32) -> (i32, i32) {
    %c0_i32 = arith.constant 0 : i32
    %c0_i32_0 = arith.constant 0 : i32
    %c0_i32_1 = arith.constant 0 : i32
    return %c0_i32, %c0_i32_0 : i32, i32
  }
  func.func @transform_3(%arg0: i32, %arg1: i32) -> (i32, i32) {
    %c0_i32 = arith.constant 0 : i32
    %c0_i32_0 = arith.constant 0 : i32
    %c0_i32_1 = arith.constant 0 : i32
    return %c0_i32, %c0_i32_0 : i32, i32
  }
  func.func @transform_4(%arg0: i32, %arg1: i32) -> (i32, i32) {
    %c0_i32 = arith.constant 0 : i32
    %c0_i32_0 = arith.constant 0 : i32
    %c0_i32_1 = arith.constant 0 : i32
    return %c0_i32, %c0_i32_0 : i32, i32
  }
  func.func @transform_5(%arg0: i32, %arg1: i32) -> (i32, i32) {
    %c0_i32 = arith.constant 0 : i32
    %c0_i32_0 = arith.constant 0 : i32
    %c0_i32_1 = arith.constant 0 : i32
    return %c0_i32, %c0_i32_0 : i32, i32
  }
  func.func @transform_6(%arg0: i32, %arg1: i32) -> (i32, i32) {
    %c0_i32 = arith.constant 0 : i32
    %c0_i32_0 = arith.constant 0 : i32
    %c0_i32_1 = arith.constant 0 : i32
    return %c0_i32, %c0_i32_0 : i32, i32
  }
  func.func @transform_7(%arg0: i32, %arg1: i32) -> (i32, i32) {
    %c0_i32 = arith.constant 0 : i32
    %c0_i32_0 = arith.constant 0 : i32
    %c0_i32_1 = arith.constant 0 : i32
    return %c0_i32, %c0_i32_0 : i32, i32
  }
  func.func @transform_8(%arg0: i32, %arg1: i32) -> (i32, i32) {
    %c0_i32 = arith.constant 0 : i32
    %c0_i32_0 = arith.constant 0 : i32
    %c0_i32_1 = arith.constant 0 : i32
    return %c0_i32, %c0_i32_0 : i32, i32
  }
  func.func @transform_9(%arg0: i32, %arg1: i32) -> (i32, i32) {
    %c0_i32 = arith.constant 0 : i32
    %c0_i32_0 = arith.constant 0 : i32
    %c0_i32_1 = arith.constant 0 : i32
    return %c0_i32, %c0_i32_0 : i32, i32
  }
  func.func @transform_10(%arg0: i32, %arg1: i32) -> (i32, i32) {
    %c0_i32 = arith.constant 0 : i32
    %c0_i32_0 = arith.constant 0 : i32
    %c0_i32_1 = arith.constant 0 : i32
    return %c0_i32, %c0_i32_0 : i32, i32
  }
  func.func @transform_11(%arg0: i32, %arg1: i32) -> (i32, i32, i32) {
    %c0_i32 = arith.constant 0 : i32
    %c0_i32_0 = arith.constant 0 : i32
    return %arg0, %c0_i32, %arg1 : i32, i32, i32
  }
  func.func @transform_12(%arg0: i32, %arg1: i32) -> (i32, i32, i32) {
    %c0_i32 = arith.constant 0 : i32
    %c0_i32_0 = arith.constant 0 : i32
    return %arg0, %c0_i32, %arg1 : i32, i32, i32
  }
}

</mosaic_0001>

<bundles_post_ra>
// kernel: tpu_custom_call.1
= control target key start
LH: loop header
LB: loop body
LE: loop exit
PB: predicated region body
PF: predicated region fallthrough
CT: control target
= control target key end

     0   :  { %s2147_s21 = smov 0   ;;  %s2149_s22 = smov 0   ;;  %s2938_s0 = inlined_call_operand.vmem [shape: f32[2,1,512], index: 0, kind: input, shape index: {}]   ;;  %s2939_s1 = inlined_call_operand.vmem [shape: f32[3,512], index: 1, kind: input, shape index: {}]   ;;  %s2940_s2 = inlined_call_operand.vmem [shape: f32[32,1], index: 2, kind: input, shape index: {}]   ;;  %s2941_s3 = inlined_call_operand.vmem [shape: f32[32,1], index: 3, kind: input, shape index: {}]   ;;  %s2942_s4 = inlined_call_operand.vmem [shape: f32[51,32], index: 4, kind: input, shape index: {}]   ;;  %s2943_s5 = inlined_call_operand.vmem [shape: f32[51,1], index: 5, kind: input, shape index: {}]   ;;  %s2944_s6 = inlined_call_operand.vmem [shape: f32[51,1], index: 6, kind: input, shape index: {}]   ;;  %s2945_s7 = inlined_call_operand.vmem [shape: f32[51,1], index: 7, kind: input, shape index: {}]   ;;  %s2946_s8 = inlined_call_operand.vmem [shape: f32[51,1], index: 8, kind: input, shape index: {}]   ;;  %s2947_s9 = inlined_call_operand.vmem [shape: f32[51,1], index: 9, kind: input, shape index: {}]   ;;  %s2948_s10 = inlined_call_operand.vmem [shape: f32[51,1], index: 10, kind: input, shape index: {}]   ;;  %s2949_s11 = inlined_call_operand.vmem [shape: f32[2,51,512], index: 11, kind: output, shape index: {0}]   ;;  %s2950_s12 = inlined_call_operand.vmem [shape: f32[2,51,512], index: 12, kind: output, shape index: {1}]  }
   0x1   :  { %s2151_s23 = smov 0  }
   0x2 LB: > { %s35_s24 = sadd.s32 1, %s2074_s22  ;;  %p1851_p0 = scmp.ge.s32.totalorder %s2078_s23, 1  ;;  %s2078_s23 = sphi %s2151_s23, %s23_s23   ;;  %s2074_s22 = sphi %s2149_s22, %s2966_s22   ;;  %s2070_s21 = sphi %s2147_s21, %s2965_s21  }
   0x3   : > { %p37_p1 = scmp.ge.s32.totalorder %s35_s24, 2  ;;  %p398_p2 = scmp.lt.s32.totalorder %s2078_s23, 3 }
   0x5   : > { %s2968_s24 = smov (%p37_p1, %s35_s24), 0  ;;  %p399_p3 = pnand %p1851_p0, %p398_p2 }
   0x7   : > { %402 = sbr.rel (%p399_p3) target bundleno = 471 (0x1d7), region = 64 }
   0xe   : > { %v558_v0 = vld [vmem:[%s2941_s3] sm:$0xff]  ;;  %v2080_v2 = vmov 0   ;;  %v559_v3 = vld [vmem:[%s2941_s3 + $0x8] sm:$0xff]  ;;  %v500_v5 = vld [vmem:[%s2940_s2 + $0x18] sm:$0xff]  ;;  %v522_v13 = vlaneseq  ;;  %v2081_v16 = vmov 0.0   ;;  %p462_p4 = scmp.lt.s32.totalorder %s2070_s21, 1 }
   0xf   : > { %v497_v1 = vld [vmem:[%s2940_s2] sm:$0xff]  ;;  %1943 = vset.pattern.permute.xlu1 %v2080_v2  ;;  %1942 = vset.pattern.permute.xlu0 %v2080_v2  ;;  %v498_v4 = vld [vmem:[%s2940_s2 + $0x8] sm:$0xff]  ;;  %v499_v6 = vld [vmem:[%s2940_s2 + $0x10] sm:$0xff]  ;;  %vm663_vm0 = vcmask 261120  }
  0x10   : > { %564 = vperm.xlu1 %1943, %v558_v0   ;;  %503 = vperm.xlu0 %1942, %v497_v1   ;;  %v561_v7 = vld [vmem:[%s2941_s3 + $0x18] sm:$0xff]  ;;  %v560_v8 = vld [vmem:[%s2941_s3 + $0x10] sm:$0xff]  ;;  %v622_v9 = vld [vmem:[%s2943_s5 + $0x8] sm:$0xff]  ;;  %v2211_v17 = vshrl.u32 %v522_v13, 7  ;;  %s2970_s21 = smov (!%p462_p4, %s2070_s21), 1 }
  0x11   : > { %v621_v10 = vld [vmem:[%s2943_s5] sm:$0xff]  ;;  %v624_v11 = vld [vmem:[%s2943_s5 + $0x18] sm:$0xff]  ;;  %v623_v12 = vld [vmem:[%s2943_s5 + $0x10] sm:$0xff]  ;;  %749 = vmatprep.mubr.f32.mxu0 %v2081_v16  ;;  %856 = vmatprep.mubr.f32.mxu1 %v2081_v16  ;;  %s1852_s13 = sshll.u32 %s2970_s21, 2  ;;  %s1915_s17 = smul.u32 224, %s2970_s21 }
  0x12   : > { %v626_v14 = vld [vmem:[%s2943_s5 + $0x28] sm:$0xff]  ;;  %v625_v15 = vld [vmem:[%s2943_s5 + $0x20] sm:$0xff]  ;;  %v627_v19 = vld [vmem:[%s2943_s5 + $0x30] sm:$0x7]  ;;  %v1147_v20 = vsub.s32 4, %v2211_v17  ;;  %v2231_v23 = vsub.s32 0, %v2211_v17  ;;  %s468_s16 = scalar_lea.vmem %s2938_s0, %s1852_s13 }
  0x13   : > { %v1097_v18 = vld [vmem:[%s2946_s8] sm:$0xff]  ;;  %v2228_v22 = vld [vmem:[%s2939_s1 + $0x8] sm:$0x77]  ;;  %v1099_v25 = vld [vmem:[%s2946_s8 + $0x10] sm:$0xff]  ;;  %v1253_v36 = vsub.s32 5, %v2211_v17  ;;  %v2267_v37 = vsub.s32 1, %v2211_v17  ;;  %s2708_s20 = scalar_lea.vmem %s2949_s11, %s1915_s17  ;;  %s2831_s27 = scalar_lea.vmem %s2950_s12, %s1915_s17 }
  0x14   : > { %569 = vperm.xlu1 %1943, %v559_v3   ;;  %508 = vperm.xlu0 %1942, %v498_v4   ;;  %v2223_v21 = vld [vmem:[%s2939_s1] sm:$0x77]  ;;  %v1098_v26 = vld [vmem:[%s2946_s8 + $0x8] sm:$0xff]  ;;  %v1156_v27 = vrot.slane %v2228_v22, %v1147_v20  ;;  %v1100_v31 = vld [vmem:[%s2946_s8 + $0x18] sm:$0xff]  ;;  %v1387_v48 = vsub.s32 6, %v2211_v17  ;;  %v2297_v49 = vsub.s32 2, %v2211_v17 }
  0x15   : > { %v1148_v24 = vrot.slane %v2223_v21, %v1147_v20  ;;  %v1101_v30 = vld [vmem:[%s2946_s8 + $0x20] sm:$0xff]  ;;  %v1103_v32 = vld [vmem:[%s2946_s8 + $0x30] sm:$0x7]  ;;  %v1102_v33 = vld [vmem:[%s2946_s8 + $0x28] sm:$0xff]  ;;  %v1254_v38 = vrot.slane %v2223_v21, %v1253_v36  ;;  %v1262_v41 = vrot.slane %v2228_v22, %v1253_v36 }
  0x16   : > { %v2245_v29 = vrot.slane %v1156_v27, %v2231_v23  ;;  %v1206_v34 = vld [vmem:[%s2947_s9 + $0x8] sm:$0xff]  ;;  %v1205_v35 = vld [vmem:[%s2947_s9] sm:$0xff]  ;;  %v1208_v39 = vld [vmem:[%s2947_s9 + $0x18] sm:$0xff]  ;;  %v1388_v50 = vrot.slane %v2223_v21, %v1387_v48  ;;  %v1396_v53 = vrot.slane %v2228_v22, %v1387_v48 }
  0x17   : > { %v2242_v28 = vrot.slane %v1148_v24, %v2231_v23  ;;  %v1207_v40 = vld [vmem:[%s2947_s9 + $0x10] sm:$0xff]  ;;  %v2278_v42 = vrot.slane %v1254_v38, %v2267_v37  ;;  %v2281_v43 = vrot.slane %v1262_v41, %v2267_v37  ;;  %v1210_v44 = vld [vmem:[%s2947_s9 + $0x28] sm:$0xff]  ;;  %v1209_v45 = vld [vmem:[%s2947_s9 + $0x20] sm:$0xff] }
  0x18   : > { %518 = vperm.xlu1 %1943, %v500_v5   ;;  %513 = vperm.xlu0 %1942, %v499_v6   ;;  %v1339_v46 = vld [vmem:[%s2948_s10] sm:$0xff]  ;;  %v1211_v47 = vld [vmem:[%s2947_s9 + $0x30] sm:$0x7]  ;;  %v1340_v52 = vld [vmem:[%s2948_s10 + $0x8] sm:$0xff]  ;;  %v2308_v54 = vrot.slane %v1388_v50, %v2297_v49  ;;  %v2311_v55 = vrot.slane %v1396_v53, %v2297_v49 }
  0x19   : > { %v1341_v51 = vld [vmem:[%s2948_s10 + $0x10] sm:$0xff]  ;;  %v1481_v56 = vld [vmem:[%s2945_s7 + $0x8] sm:$0xff]  ;;  %v1480_v57 = vld [vmem:[%s2945_s7] sm:$0xff] }
  0x1a   : > { %v1483_v58 = vld [vmem:[%s2945_s7 + $0x18] sm:$0xff]  ;;  %v1482_v59 = vld [vmem:[%s2945_s7 + $0x10] sm:$0xff]  ;;  %v1485_v60 = vld [vmem:[%s2945_s7 + $0x28] sm:$0xff] }
  0x1b   : > { %v1484_v61 = vld [vmem:[%s2945_s7 + $0x20] sm:$0xff]  ;;  %v1342_v62 = vld [vmem:[%s2948_s10 + $0x18] sm:$0xff]  ;;  %v1486_v63 = vld [vmem:[%s2945_s7 + $0x30] sm:$0x7] }
  0x1c   : > { %579 = vperm.xlu1 %1943, %v561_v7   ;;  %574 = vperm.xlu0 %1942, %v560_v8   ;;  %v1344_v0 = vld [vmem:[%s2948_s10 + $0x28] sm:$0xff]  ;;  %v1343_v1 = vld [vmem:[%s2948_s10 + $0x20] sm:$0xff]  ;;  %v1345_v3 = vld [vmem:[%s2948_s10 + $0x30] sm:$0x7] }
  0x1d   : > { %v1473_v2 = vld [vmem:[%s2944_s6] sm:$0xff]  ;;  %v1475_v4 = vld [vmem:[%s2944_s6 + $0x10] sm:$0xff]  ;;  %v1474_v5 = vld [vmem:[%s2944_s6 + $0x8] sm:$0xff] }
  0x1e   : > { %v1477_v6 = vld [vmem:[%s2944_s6 + $0x20] sm:$0xff]  ;;  %v1476_v7 = vld [vmem:[%s2944_s6 + $0x18] sm:$0xff]  ;;  %v1479_v8 = vld [vmem:[%s2944_s6 + $0x30] sm:$0x7] }
  0x20   : > { %635 = vperm.xlu1 %1943, %v622_v9   ;;  %630 = vperm.xlu0 %1942, %v621_v10   ;;  %v1478_v9 = vld [vmem:[%s2944_s6 + $0x28] sm:$0xff]  ;;  %v536_v10 = vsub.s32 3, %v2211_v17 }
  0x24   : > { %645 = vperm.xlu1 %1943, %v624_v11   ;;  %640 = vperm.xlu0 %1942, %v623_v12   ;;  %v496_v11 = vld [vmem:[%s468_s16] sm:$0xf] }
  0x25   : > { %v525_v12 = vrot.slane %v496_v11, %v2231_v23  ;;  %v533_v13 = vrot.slane %v496_v11, %v2297_v49 }
  0x28   : > { %655 = vperm.xlu1 %1943, %v626_v14   ;;  %650 = vperm.xlu0 %1942, %v625_v15   ;;  %v529_v14 = vrot.slane %v496_v11, %v2267_v37  ;;  %v537_v15 = vrot.slane %v496_v11, %v536_v10 }
  0x2c   : > { %1106 = vperm.xlu1 %1943, %v1097_v18   ;;  %660 = vperm.xlu0 %1942, %v627_v19  }
  0x30   : > { %1116 = vperm.xlu1 %1943, %v1099_v25   ;;  %1111 = vperm.xlu0 %1942, %v1098_v26  }
  0x34   : > { %1126 = vperm.xlu1 %1943, %v1101_v30   ;;  %1121 = vperm.xlu0 %1942, %v1100_v31  }
  0x38   : > { %1136 = vperm.xlu1 %1943, %v1103_v32   ;;  %1131 = vperm.xlu0 %1942, %v1102_v33  }
  0x3c   : > { %1219 = vperm.xlu1 %1943, %v1206_v34   ;;  %1214 = vperm.xlu0 %1942, %v1205_v35  }
  0x40   : > { %1229 = vperm.xlu1 %1943, %v1208_v39   ;;  %1224 = vperm.xlu0 %1942, %v1207_v40  }
  0x44   : > { %1239 = vperm.xlu1 %1943, %v1210_v44   ;;  %1234 = vperm.xlu0 %1942, %v1209_v45  }
  0x48   : > { %1348 = vperm.xlu1 %1943, %v1339_v46   ;;  %1244 = vperm.xlu0 %1942, %v1211_v47  }
  0x4c   : > { %1358 = vperm.xlu1 %1943, %v1341_v51   ;;  %1353 = vperm.xlu0 %1942, %v1340_v52  }
  0x50   : > { %1494 = vperm.xlu1 %1943, %v1481_v56   ;;  %1489 = vperm.xlu0 %1942, %v1480_v57  }
  0x54   : > { %1504 = vperm.xlu1 %1943, %v1483_v58   ;;  %1499 = vperm.xlu0 %1942, %v1482_v59  }
  0x58   : > { %1514 = vperm.xlu1 %1943, %v1485_v60   ;;  %1509 = vperm.xlu0 %1942, %v1484_v61  }
  0x5c   : > { %1363 = vperm.xlu1 %1943, %v1342_v62   ;;  %1519 = vperm.xlu0 %1942, %v1486_v63  }
  0x60   : > { %1373 = vperm.xlu1 %1943, %v1344_v0   ;;  %1368 = vperm.xlu0 %1942, %v1343_v1  }
  0x64   : > { %1552 = vperm.xlu1 %1943, %v1473_v2   ;;  %1378 = vperm.xlu0 %1942, %v1345_v3  }
  0x68   : > { %1562 = vperm.xlu1 %1943, %v1475_v4   ;;  %1557 = vperm.xlu0 %1942, %v1474_v5  }
  0x6c   : > { %1572 = vperm.xlu1 %1943, %v1477_v6   ;;  %1567 = vperm.xlu0 %1942, %v1476_v7  }
  0x70   : > { %1582 = vperm.xlu1 %1943, %v1479_v8   ;;  %1577 = vperm.xlu0 %1942, %v1478_v9  }
  0x8f   : > { %v565_v18 = vpop.permute.xlu1 %564  ;;  %v504_v19 = vpop.permute.xlu0 %503 }
  0x90   : > { %v542_v20 = vmul.f32 %v525_v12, %v504_v19  ;;  %v544_v24 = vmul.f32 %v533_v13, %v504_v19  ;;  %v543_v25 = vmul.f32 %v529_v14, %v504_v19  ;;  %v545_v26 = vmul.f32 %v537_v15, %v504_v19 }
  0x92   : > { %v583_v31 = vadd.f32 %v565_v18, %v543_v25  ;;  %v585_v32 = vadd.f32 %v565_v18, %v545_v26  ;;  %v582_v33 = vadd.f32 %v565_v18, %v542_v20  ;;  %v584_v36 = vadd.f32 %v565_v18, %v544_v24 }
  0x93   : > { %v570_v27 = vpop.permute.xlu1 %569  ;;  %v509_v30 = vpop.permute.xlu0 %508 }
  0x94   : > { %v546_v17 = vmul.f32 %v525_v12, %v509_v30  ;;  %v548_v34 = vmul.f32 %v533_v13, %v509_v30  ;;  %v547_v35 = vmul.f32 %v529_v14, %v509_v30  ;;  %v549_v38 = vmul.f32 %v537_v15, %v509_v30 }
  0x95   : > { %v599_v47 = vmax.f32 %v583_v31, 0.0  ;;  %v601_v48 = vmax.f32 %v585_v32, 0.0  ;;  %v598_v50 = vmax.f32 %v582_v33, 0.0  ;;  %v600_v51 = vmax.f32 %v584_v36, 0.0 }
  0x96   : > { %v587_v39 = vadd.f32 %v570_v27, %v547_v35  ;;  %v586_v40 = vadd.f32 %v570_v27, %v546_v17  ;;  %v588_v41 = vadd.f32 %v570_v27, %v548_v34  ;;  %v589_v46 = vadd.f32 %v570_v27, %v549_v38 }
  0x97   : > { %v519_v44 = vpop.permute.xlu1 %518  ;;  %v514_v45 = vpop.permute.xlu0 %513 }
  0x98   : > { %v554_v52 = vmul.f32 %v525_v12, %v519_v44  ;;  %v555_v53 = vmul.f32 %v529_v14, %v519_v44  ;;  %v556_v56 = vmul.f32 %v533_v13, %v519_v44  ;;  %v557_v57 = vmul.f32 %v537_v15, %v519_v44  ;;  %v615_v44 = vld [vmem:[%s2942_s4 + $0x8] sm:$0xff] }
  0x99   : > { %v603_v58 = vmax.f32 %v587_v39, 0.0  ;;  %v605_v59 = vmax.f32 %v589_v46, 0.0  ;;  %v602_v60 = vmax.f32 %v586_v40, 0.0  ;;  %v604_v61 = vmax.f32 %v588_v41, 0.0  ;;  %v614_v39 = vld [vmem:[%s2942_s4] sm:$0xff] }
  0x9a   : > { %v550_v62 = vmul.f32 %v525_v12, %v514_v45  ;;  %v551_v63 = vmul.f32 %v529_v14, %v514_v45  ;;  %v552_v0 = vmul.f32 %v533_v13, %v514_v45  ;;  %v553_v1 = vmul.f32 %v537_v15, %v514_v45 }
  0x9b   : > { %v580_v2 = vpop.permute.xlu1 %579  ;;  %v575_v3 = vpop.permute.xlu0 %574  ;;  %v1899_v18 = vpack.c.bf16 %v603_v58, %v599_v47  ;;  %v1907_v19 = vpack.c.bf16 %v605_v59, %v601_v48  ;;  %v1901_v20 = vpack.c.bf16 %v602_v60, %v598_v50  ;;  %v1909_v24 = vpack.c.bf16 %v604_v61, %v600_v51  ;;  %v616_v47 = vld [vmem:[%s2942_s4 + $0x10] sm:$0xff] }
  0x9c   : > { %v594_v4 = vadd.f32 %v580_v2, %v554_v52  ;;  %v595_v5 = vadd.f32 %v580_v2, %v555_v53  ;;  %v596_v6 = vadd.f32 %v580_v2, %v556_v56  ;;  %v597_v7 = vadd.f32 %v580_v2, %v557_v57  ;;  %v617_v57 = vld [vmem:[%s2942_s4 + $0x18] sm:$0xff] }
  0x9d   : > { %v590_v8 = vadd.f32 %v575_v3, %v550_v62  ;;  %v591_v9 = vadd.f32 %v575_v3, %v551_v63  ;;  %v592_v10 = vadd.f32 %v575_v3, %v552_v0  ;;  %v593_v11 = vadd.f32 %v575_v3, %v553_v1  ;;  %1900 = vmatprep.subr.bf16.mxu0 %v1899_v18 }
  0x9e   : > { %v611_v14 = vmax.f32 %v595_v5, 0.0  ;;  %v613_v26 = vmax.f32 %v597_v7, 0.0  ;;  %1908 = vmatprep.subr.bf16.mxu1 %v1907_v19  ;;  %v610_v30 = vmax.f32 %v594_v4, 0.0  ;;  %v612_v32 = vmax.f32 %v596_v6, 0.0  ;;  %1902 = vmatpush1.bf16.msra.mxu0 %v1901_v20 }
  0x9f   : > { %v2379_v25 = vpop.permute.xlu1 %635  ;;  %v2381_v12 = vpop.permute.xlu0 %630  ;;  %v607_v13 = vmax.f32 %v591_v9, 0.0  ;;  %v609_v15 = vmax.f32 %v593_v11, 0.0  ;;  %v606_v27 = vmax.f32 %v590_v8, 0.0  ;;  %v608_v31 = vmax.f32 %v592_v10, 0.0  ;;  %1910 = vmatpush1.bf16.msra.mxu1 %v1909_v24 }
  0xa0   : > { %v1144_v48 = vrot.slane %v2223_v21, %v2231_v23  ;;  %v1152_v50 = vrot.slane %v2228_v22, %v2231_v23  ;;  %v1250_v53 = vrot.slane %v2223_v21, %v2267_v37  ;;  %v1258_v56 = vrot.slane %v2228_v22, %v2267_v37 }
  0xa1   : > { %v1903_v33 = vpack.c.bf16 %v611_v14, %v607_v13  ;;  %v1911_v17 = vpack.c.bf16 %v613_v26, %v609_v15  ;;  %v1905_v34 = vpack.c.bf16 %v610_v30, %v606_v27  ;;  %v1913_v35 = vpack.c.bf16 %v612_v32, %v608_v31  ;;  %v619_v31 = vld [vmem:[%s2942_s4 + $0x28] sm:$0xff] }
  0xa2   : > { %v1384_v58 = vrot.slane %v2223_v21, %v2297_v49  ;;  %v1164_v59 = vrot.slane %v1144_v48, %v2231_v23  ;;  %v1172_v60 = vrot.slane %v1152_v50, %v2231_v23  ;;  %v1392_v61 = vrot.slane %v2228_v22, %v2297_v49 }
  0xa3   : > { %1904 = vmatprep.subr.bf16.mxu0 %v1903_v33  ;;  %1912 = vmatprep.subr.bf16.mxu1 %v1911_v17  ;;  %v2383_v36 = vpop.permute.xlu1 %645  ;;  %v2385_v38 = vpop.permute.xlu0 %640  ;;  %v2432_v0 = vrot.slane %v1250_v53, %v2267_v37  ;;  %v2435_v1 = vrot.slane %v1258_v56, %v2267_v37  ;;  %v618_v37 = vld [vmem:[%s2942_s4 + $0x20] sm:$0xff] }
  0xa4   : > { %1906 = vmatpush1.bf16.msra.mxu0 %v1905_v34  ;;  %1914 = vmatpush1.bf16.msra.mxu1 %v1913_v35  ;;  %v2459_v5 = vrot.slane %v1384_v58, %v2297_v49  ;;  %v2467_v9 = vrot.slane %v1392_v61, %v2297_v49 }
  0xa7   : > { %v2390_v40 = vpop.permute.xlu1 %655  ;;  %v2392_v41 = vpop.permute.xlu0 %650  ;;  %1855 = vmatmul.mubr.msk.f32.vlgmr.msra.gmra.mrb[0].mxu0 %vm663_vm0, %v614_v39  ;;  %1862 = vmatmul.mubr.msk.f32.vlgmr.msra.gmra.mrb[0].mxu1 %vm663_vm0, %v614_v39 }
  0xa8   : > { %755 = vmatprep.mubr.f32.mxu0 %v2081_v16  ;;  %862 = vmatprep.mubr.f32.mxu1 %v2081_v16 }
  0xab   : > { %v1107_v45 = vpop.permute.xlu1 %1106  ;;  %v2401_v46 = vpop.permute.xlu0 %660  ;;  %1856 = vmatmul.mubr.msk.f32.gmra.mrb[2].mxu0 %vm663_vm0, %v615_v44  ;;  %1863 = vmatmul.mubr.msk.f32.gmra.mrb[2].mxu1 %vm663_vm0, %v615_v44 }
  0xac   : > { %761 = vmatprep.mubr.f32.mxu0 %v2081_v16  ;;  %868 = vmatprep.mubr.f32.mxu1 %v2081_v16  ;;  %v1177_v6 = vmul.f32 %v1164_v59, %v1107_v45  ;;  %v1178_v7 = vmul.f32 %v2242_v28, %v1107_v45  ;;  %v1179_v10 = vmul.f32 %v1172_v60, %v1107_v45 }
  0xad   : > { %v1180_v11 = vmul.f32 %v2245_v29, %v1107_v45 }
  0xaf   : > { %v1117_v51 = vpop.permute.xlu1 %1116  ;;  %v1112_v52 = vpop.permute.xlu0 %1111  ;;  %1857 = vmatmul.mubr.msk.f32.gmra.mrb[4].mxu0 %vm663_vm0, %v616_v47  ;;  %1864 = vmatmul.mubr.msk.f32.gmra.mrb[4].mxu1 %vm663_vm0, %v616_v47 }
  0xb0   : > { %767 = vmatprep.mubr.f32.mxu0 %v2081_v16  ;;  %874 = vmatprep.mubr.f32.mxu1 %v2081_v16  ;;  %v2470_v18 = vmul.f32 %v1164_v59, %v1117_v51  ;;  %v2473_v19 = vmul.f32 %v2242_v28, %v1117_v51  ;;  %v1187_v32 = vmul.f32 %v1172_v60, %v1117_v51 }
  0xb1   : > { %v1188_v33 = vmul.f32 %v2245_v29, %v1117_v51  ;;  %v1181_v17 = vmul.f32 %v1164_v59, %v1112_v52  ;;  %v1182_v35 = vmul.f32 %v2242_v28, %v1112_v52  ;;  %v1183_v39 = vmul.f32 %v1172_v60, %v1112_v52 }
  0xb2   : > { %v1184_v44 = vmul.f32 %v2245_v29, %v1112_v52  ;;  %v620_v52 = vld [vmem:[%s2942_s4 + $0x30] sm:$0x7] }
  0xb3   : > { %v1127_v62 = vpop.permute.xlu1 %1126  ;;  %v1122_v63 = vpop.permute.xlu0 %1121  ;;  %1858 = vmatmul.mubr.msk.f32.gmra.mrb[6].mxu0 %vm663_vm0, %v617_v57  ;;  %1865 = vmatmul.mubr.msk.f32.gmra.mrb[6].mxu1 %vm663_vm0, %v617_v57 }
  0xb4   : > { %v2439_v21 = vmul.f32 %v1164_v59, %v1127_v62  ;;  %v2442_v23 = vmul.f32 %v2242_v28, %v1127_v62  ;;  %v2444_v2 = vmul.f32 %v1172_v60, %v1127_v62  ;;  %v2447_v22 = vmul.f32 %v2245_v29, %v1127_v62  ;;  %773 = vmatprep.mubr.f32.mxu0 %v2081_v16 }
  0xb5   : > { %v2450_v3 = vmul.f32 %v2242_v28, %v1122_v63  ;;  %v2452_v4 = vmul.f32 %v1172_v60, %v1122_v63  ;;  %v2463_v8 = vmul.f32 %v2245_v29, %v1122_v63  ;;  %880 = vmatprep.mubr.f32.mxu1 %v2081_v16  ;;  %v1189_v45 = vmul.f32 %v1164_v59, %v1122_v63 }
  0xb7   : > { %v1137_v20 = vpop.permute.xlu1 %1136  ;;  %v1132_v24 = vpop.permute.xlu0 %1131  ;;  %1859 = vmatmul.mubr.msk.f32.gmra.mrb[8].mxu0 %vm663_vm0, %v618_v37  ;;  %1866 = vmatmul.mubr.msk.f32.gmra.mrb[8].mxu1 %vm663_vm0, %v618_v37 }
  0xb8   : > { %v2477_v13 = vmul.f32 %v1164_v59, %v1137_v20  ;;  %v2480_v14 = vmul.f32 %v2242_v28, %v1137_v20  ;;  %v2482_v49 = vmul.f32 %v1172_v60, %v1137_v20  ;;  %v2485_v15 = vmul.f32 %v2245_v29, %v1137_v20  ;;  %779 = vmatprep.mubr.f32.mxu0 %v2081_v16 }
  0xb9   : > { %v2487_v26 = vmul.f32 %v1164_v59, %v1132_v24  ;;  %v2490_v27 = vmul.f32 %v2242_v28, %v1132_v24  ;;  %v2492_v30 = vmul.f32 %v1172_v60, %v1132_v24  ;;  %v1200_v34 = vmul.f32 %v2245_v29, %v1132_v24  ;;  %886 = vmatprep.mubr.f32.mxu1 %v2081_v16 }
  0xbb   : > { %v1220_v47 = vpop.permute.xlu1 %1219  ;;  %v1215_v48 = vpop.permute.xlu0 %1214  ;;  %1860 = vmatmul.mubr.msk.f32.gmra.mrb[10].mxu0 %vm663_vm0, %v619_v31  ;;  %1867 = vmatmul.mubr.msk.f32.gmra.mrb[10].mxu1 %vm663_vm0, %v619_v31 }
  0xbc   : > { %v1287_v50 = vmul.f32 %v2432_v0, %v1220_v47  ;;  %v1288_v51 = vmul.f32 %v2278_v42, %v1220_v47  ;;  %v1289_v53 = vmul.f32 %v2435_v1, %v1220_v47  ;;  %v1290_v56 = vmul.f32 %v2281_v43, %v1220_v47  ;;  %785 = vmatprep.mubr.f32.mxu0 %v2081_v16 }
  0xbd   : > { %v1283_v28 = vmul.f32 %v2432_v0, %v1215_v48  ;;  %v1284_v57 = vmul.f32 %v2278_v42, %v1215_v48  ;;  %v1285_v29 = vmul.f32 %v2435_v1, %v1215_v48  ;;  %v1286_v61 = vmul.f32 %v2281_v43, %v1215_v48  ;;  %892 = vmatprep.mubr.f32.mxu1 %v2081_v16 }
  0xbe   : > { %v2516_v58 = vadd.f32 %v1287_v50, %v1181_v17  ;;  %v2518_v59 = vadd.f32 %v1288_v51, %v1182_v35  ;;  %v2520_v60 = vadd.f32 %v1289_v53, %v1183_v39  ;;  %v2524_v62 = vadd.f32 %v1290_v56, %v1184_v44 }
  0xbf   : > { %v1311_v63 = vadd.f32 %v1283_v28, %v1177_v6  ;;  %v1312_v37 = vadd.f32 %v1284_v57, %v1178_v7  ;;  %v1313_v20 = vadd.f32 %v1285_v29, %v1179_v10  ;;  %v1230_v24 = vpop.permute.xlu1 %1229  ;;  %v1225_v31 = vpop.permute.xlu0 %1224  ;;  %v1314_v47 = vadd.f32 %v1286_v61, %v1180_v11  ;;  %1861 = vmatmul.mubr.msk.f32.gmra.mrb[12].mxu0 %vm663_vm0, %v620_v52 }
  0xc0   : > { %1868 = vmatmul.mubr.msk.f32.gmra.mrb[12].mxu1 %vm663_vm0, %v620_v52  ;;  %v1295_v17 = vmul.f32 %v2432_v0, %v1230_v24  ;;  %v1296_v35 = vmul.f32 %v2278_v42, %v1230_v24  ;;  %v1297_v39 = vmul.f32 %v2435_v1, %v1230_v24  ;;  %v1298_v16 = vmul.f32 %v2281_v43, %v1230_v24 }
  0xc1   : > { %v1291_v44 = vmul.f32 %v2432_v0, %v1225_v31  ;;  %v1292_v6 = vmul.f32 %v2278_v42, %v1225_v31  ;;  %v1293_v11 = vmul.f32 %v2435_v1, %v1225_v31  ;;  %v1294_v48 = vmul.f32 %v2281_v43, %v1225_v31 }
  0xc2   : > { %v2534_v7 = vadd.f32 %v1295_v17, %v1189_v45  ;;  %v2537_v10 = vadd.f32 %v1296_v35, %v2450_v3  ;;  %v2542_v50 = vadd.f32 %v1297_v39, %v2452_v4  ;;  %v2545_v51 = vadd.f32 %v1298_v16, %v2463_v8 }
  0xc3   : > { %v1319_v53 = vadd.f32 %v1291_v44, %v2470_v18  ;;  %v1320_v56 = vadd.f32 %v1292_v6, %v2473_v19  ;;  %v1240_v28 = vpop.permute.xlu1 %1239  ;;  %v1235_v45 = vpop.permute.xlu0 %1234  ;;  %v1321_v57 = vadd.f32 %v1293_v11, %v1187_v32  ;;  %v1322_v29 = vadd.f32 %v1294_v48, %v1188_v33 }
  0xc4   : > { %v1303_v3 = vmul.f32 %v2432_v0, %v1240_v28  ;;  %v1304_v52 = vmul.f32 %v2278_v42, %v1240_v28  ;;  %v1305_v61 = vmul.f32 %v2435_v1, %v1240_v28  ;;  %v1306_v4 = vmul.f32 %v2281_v43, %v1240_v28 }
  0xc5   : > { %v1299_v24 = vmul.f32 %v2432_v0, %v1235_v45  ;;  %v1300_v8 = vmul.f32 %v2278_v42, %v1235_v45  ;;  %v1301_v32 = vmul.f32 %v2435_v1, %v1235_v45  ;;  %v1302_v33 = vmul.f32 %v2281_v43, %v1235_v45 }
  0xc6   : > { %v2556_v18 = vadd.f32 %v1303_v3, %v2487_v26  ;;  %v2559_v19 = vadd.f32 %v1304_v52, %v2490_v27  ;;  %v2564_v31 = vadd.f32 %v1305_v61, %v2492_v30  ;;  %v2566_v17 = vadd.f32 %v1306_v4, %v1200_v34 }
  0xc7   : > { %v2569_v35 = vadd.f32 %v1299_v24, %v2439_v21  ;;  %v2572_v39 = vadd.f32 %v1300_v8, %v2442_v23  ;;  %v1349_v26 = vpop.permute.xlu1 %1348  ;;  %v1245_v16 = vpop.permute.xlu0 %1244  ;;  %v2575_v27 = vadd.f32 %v1301_v32, %v2444_v2  ;;  %v2578_v44 = vadd.f32 %v1302_v33, %v2447_v22 }
  0xc8   : > { %v1417_v6 = vmul.f32 %v2459_v5, %v1349_v26  ;;  %v1418_v30 = vmul.f32 %v2308_v54, %v1349_v26  ;;  %v1419_v34 = vmul.f32 %v2467_v9, %v1349_v26  ;;  %v1420_v21 = vmul.f32 %v2311_v55, %v1349_v26 }
  0xc9   : > { %v1307_v11 = vmul.f32 %v2432_v0, %v1245_v16  ;;  %v1308_v23 = vmul.f32 %v2278_v42, %v1245_v16  ;;  %v1309_v2 = vmul.f32 %v2435_v1, %v1245_v16  ;;  %v1310_v22 = vmul.f32 %v2281_v43, %v1245_v16 }
  0xca   : > { %v2586_v48 = vadd.f32 %v1417_v6, %v1311_v63  ;;  %v2588_v28 = vadd.f32 %v1418_v30, %v1312_v37  ;;  %v2592_v45 = vadd.f32 %v1419_v34, %v1313_v20  ;;  %v2594_v3 = vadd.f32 %v1420_v21, %v1314_v47 }
  0xcb   : > { %v1335_v52 = vadd.f32 %v1307_v11, %v2477_v13  ;;  %v1336_v61 = vadd.f32 %v1308_v23, %v2480_v14  ;;  %v1359_v4 = vpop.permute.xlu1 %1358  ;;  %v1354_v0 = vpop.permute.xlu0 %1353  ;;  %v1337_v42 = vadd.f32 %v1309_v2, %v2482_v49  ;;  %v1338_v63 = vadd.f32 %v1310_v22, %v2485_v15 }
  0xcc   : > { %v1425_v37 = vmul.f32 %v2459_v5, %v1359_v4  ;;  %v1426_v1 = vmul.f32 %v2308_v54, %v1359_v4  ;;  %v1427_v43 = vmul.f32 %v2467_v9, %v1359_v4  ;;  %v1428_v20 = vmul.f32 %v2311_v55, %v1359_v4 }
  0xcd   : > { %v1421_v47 = vmul.f32 %v2459_v5, %v1354_v0  ;;  %v1422_v13 = vmul.f32 %v2308_v54, %v1354_v0  ;;  %v1423_v49 = vmul.f32 %v2467_v9, %v1354_v0  ;;  %v1424_v15 = vmul.f32 %v2311_v55, %v1354_v0 }
  0xce   : > { %v2606_v24 = vadd.f32 %v1425_v37, %v1319_v53  ;;  %v2608_v14 = vadd.f32 %v1426_v1, %v1320_v56  ;;  %v2612_v8 = vadd.f32 %v1427_v43, %v1321_v57  ;;  %v2614_v32 = vadd.f32 %v1428_v20, %v1322_v29 }
  0xcf   : > { %v2617_v33 = vadd.f32 %v1421_v47, %v2516_v58  ;;  %v2620_v26 = vadd.f32 %v1422_v13, %v2518_v59  ;;  %v2622_v16 = vpop.permute.xlu1 %1494  ;;  %v2624_v53 = vpop.permute.xlu0 %1489  ;;  %v2627_v56 = vadd.f32 %v1423_v49, %v2520_v60  ;;  %v2630_v6 = vadd.f32 %v1424_v15, %v2524_v62 }
  0xd3   : > { %v2632_v57 = vpop.permute.xlu1 %1504  ;;  %v2634_v29 = vpop.permute.xlu0 %1499 }
  0xd7   : > { %v2636_v30 = vpop.permute.xlu1 %1514  ;;  %v2638_v58 = vpop.permute.xlu0 %1509 }
  0xdb   : > { %v1364_v59 = vpop.permute.xlu1 %1363  ;;  %v2640_v34 = vpop.permute.xlu0 %1519 }
  0xdc   : > { %v1429_v21 = vmul.f32 %v2459_v5, %v1364_v59  ;;  %v1430_v11 = vmul.f32 %v2308_v54, %v1364_v59  ;;  %v1431_v60 = vmul.f32 %v2467_v9, %v1364_v59  ;;  %v1432_v62 = vmul.f32 %v2311_v55, %v1364_v59 }
  0xde   : > { %v2647_v23 = vadd.f32 %v1429_v21, %v2534_v7  ;;  %v2650_v2 = vadd.f32 %v1430_v11, %v2537_v10  ;;  %v2653_v22 = vadd.f32 %v1431_v60, %v2542_v50  ;;  %v2656_v4 = vadd.f32 %v1432_v62, %v2545_v51 }
  0xdf   : > { %v1374_v0 = vpop.permute.xlu1 %1373  ;;  %v1369_v37 = vpop.permute.xlu0 %1368 }
  0xe0   : > { %v1437_v1 = vmul.f32 %v2459_v5, %v1374_v0  ;;  %v1438_v43 = vmul.f32 %v2308_v54, %v1374_v0  ;;  %v1439_v20 = vmul.f32 %v2467_v9, %v1374_v0  ;;  %v1440_v7 = vmul.f32 %v2311_v55, %v1374_v0 }
  0xe1   : > { %v1433_v47 = vmul.f32 %v2459_v5, %v1369_v37  ;;  %v1434_v10 = vmul.f32 %v2308_v54, %v1369_v37  ;;  %v1435_v50 = vmul.f32 %v2467_v9, %v1369_v37  ;;  %v1436_v13 = vmul.f32 %v2311_v55, %v1369_v37 }
  0xe2   : > { %v2667_v51 = vadd.f32 %v1437_v1, %v2556_v18  ;;  %v2670_v49 = vadd.f32 %v1438_v43, %v2559_v19  ;;  %v2673_v15 = vadd.f32 %v1439_v20, %v2564_v31  ;;  %v2676_v59 = vadd.f32 %v1440_v7, %v2566_v17 }
  0xe3   : > { %v2679_v21 = vadd.f32 %v1433_v47, %v2569_v35  ;;  %v2682_v11 = vadd.f32 %v1434_v10, %v2572_v39  ;;  %v2685_v18 = vadd.f32 %v1435_v50, %v2575_v27  ;;  %v2688_v19 = vadd.f32 %v1436_v13, %v2578_v44  ;;  %v1379_v60 = vpop.permute.xlu0 %1378 }
  0xe4   : > { %2951 = vst [vmem:[#allocation2_spill] sm:$0xff] %v2670_v49  ;;  %2952 = vst [vmem:[#allocation3_spill] sm:$0xff] %v2673_v15  ;;  %v1441_v31 = vmul.f32 %v2459_v5, %v1379_v60  ;;  %v1442_v62 = vmul.f32 %v2308_v54, %v1379_v60  ;;  %v1443_v17 = vmul.f32 %v2467_v9, %v1379_v60 }
  0xe5   : > { %2953 = vst [vmem:[#allocation4_spill] sm:$0xff] %v2676_v59  ;;  %v1444_v0 = vmul.f32 %v2311_v55, %v1379_v60 }
  0xe6   : > { %v2694_v35 = vadd.f32 %v1441_v31, %v1335_v52  ;;  %v2696_v37 = vadd.f32 %v1442_v62, %v1336_v61  ;;  %v2698_v39 = vadd.f32 %v1443_v17, %v1337_v42 }
  0xe7   : > { %v2700_v27 = vadd.f32 %v1444_v0, %v1338_v63 }
  0xe8   : > { %2954 = vst [vmem:[#allocation5_spill] sm:$0xff] %v2694_v35  ;;  %2955 = vst [vmem:[#allocation6_spill] sm:$0xff] %v2696_v37 }
  0xe9   : > { %2956 = vst [vmem:[#allocation7_spill] sm:$0xff] %v2698_v39  ;;  %2957 = vst [vmem:[#allocation8_spill] sm:$0xff] %v2700_v27 }
 0x17a   : > { %v751_v54 = vpop.f32.mrb[0].mxu0  ;;  %v858_v55 = vpop.f32.mrb[0].mxu1 }
 0x17b   : > { %v752_v5 = vadd.f32 %v751_v54, %v2381_v12  ;;  %v859_v9 = vadd.f32 %v858_v55, %v2381_v12  ;;  %v753_v44 = vpop.f32.mrb[1].mxu0  ;;  %v860_v52 = vpop.f32.mrb[1].mxu1 }
 0x17c   : > { %v754_v61 = vadd.f32 %v753_v44, %v2381_v12  ;;  %v861_v42 = vadd.f32 %v860_v52, %v2381_v12 }
 0x17d   : > { %899 = vst [vmem:[%s2708_s20] sm:$0xff] %v752_v5  ;;  %v1869_v63 = vmul.f32 -1.442695, %v752_v5  ;;  %901 = vst [vmem:[%s2708_s20 + $0x10] sm:$0xff] %v859_v9  ;;  %v1871_v1 = vmul.f32 -1.442695, %v859_v9 }
 0x17e   : > { %900 = vst [vmem:[%s2708_s20 + $0x8] sm:$0xff] %v754_v61  ;;  %v1870_v43 = vmul.f32 -1.442695, %v754_v61  ;;  %902 = vst [vmem:[%s2708_s20 + $0x18] sm:$0xff] %v861_v42  ;;  %v1872_v20 = vmul.f32 -1.442695, %v861_v42 }
 0x17f   : > { %v757_v7 = vpop.f32.mrb[2].mxu0  ;;  %v864_v47 = vpop.f32.mrb[2].mxu1  ;;  %1944 = vpow2.f32 %v1869_v63 }
 0x180   : > { %v758_v10 = vadd.f32 %v757_v7, %v2379_v25  ;;  %v865_v50 = vadd.f32 %v864_v47, %v2379_v25  ;;  %v759_v12 = vpop.f32.mrb[3].mxu0  ;;  %v866_v13 = vpop.f32.mrb[3].mxu1  ;;  %1946 = vpow2.f32 %v1871_v1 }
 0x181   : > { %v760_v60 = vadd.f32 %v759_v12, %v2379_v25  ;;  %v867_v31 = vadd.f32 %v866_v13, %v2379_v25  ;;  %1948 = vpow2.f32 %v1870_v43 }
 0x182   : > { %903 = vst [vmem:[%s2708_s20 + $0x20] sm:$0xff] %v758_v10  ;;  %v1873_v62 = vmul.f32 -1.442695, %v758_v10  ;;  %905 = vst [vmem:[%s2708_s20 + $0x30] sm:$0xff] %v865_v50  ;;  %v1875_v17 = vmul.f32 -1.442695, %v865_v50  ;;  %1950 = vpow2.f32 %v1872_v20 }
 0x183   : > { %904 = vst [vmem:[%s2708_s20 + $0x28] sm:$0xff] %v760_v60  ;;  %v1874_v0 = vmul.f32 -1.442695, %v760_v60  ;;  %906 = vst [vmem:[%s2708_s20 + $0x38] sm:$0xff] %v867_v31  ;;  %v1876_v54 = vmul.f32 -1.442695, %v867_v31 }
 0x184   : > { %v763_v55 = vpop.f32.mrb[4].mxu0  ;;  %v870_v5 = vpop.f32.mrb[4].mxu1  ;;  %1952 = vpow2.f32 %v1873_v62 }
 0x185   : > { %v764_v9 = vadd.f32 %v763_v55, %v2385_v38  ;;  %v871_v25 = vadd.f32 %v870_v5, %v2385_v38  ;;  %v765_v44 = vpop.f32.mrb[5].mxu0  ;;  %v872_v52 = vpop.f32.mrb[5].mxu1  ;;  %1954 = vpow2.f32 %v1875_v17 }
 0x186   : > { %v766_v61 = vadd.f32 %v765_v44, %v2385_v38  ;;  %v873_v42 = vadd.f32 %v872_v52, %v2385_v38  ;;  %1956 = vpow2.f32 %v1874_v0  ;;  %v769_v7 = vpop.f32.mrb[6].mxu0  ;;  %v876_v47 = vpop.f32.mrb[6].mxu1 }
 0x187   : > { %907 = vst [vmem:[%s2708_s20 + $0x40] sm:$0xff] %v764_v9  ;;  %v1877_v63 = vmul.f32 -1.442695, %v764_v9  ;;  %909 = vst [vmem:[%s2708_s20 + $0x50] sm:$0xff] %v871_v25  ;;  %v1879_v1 = vmul.f32 -1.442695, %v871_v25  ;;  %1958 = vpow2.f32 %v1876_v54  ;;  %v770_v10 = vadd.f32 %v769_v7, %v2383_v36 }
 0x188   : > { %908 = vst [vmem:[%s2708_s20 + $0x48] sm:$0xff] %v766_v61  ;;  %v1878_v43 = vmul.f32 -1.442695, %v766_v61  ;;  %910 = vst [vmem:[%s2708_s20 + $0x58] sm:$0xff] %v873_v42  ;;  %v1880_v20 = vmul.f32 -1.442695, %v873_v42  ;;  %v2736_v38 = vadd.f32 %v876_v47, %v2383_v36 }
 0x189   : > { %1960 = vpow2.f32 %v1877_v63  ;;  %v771_v50 = vpop.f32.mrb[7].mxu0  ;;  %v878_v12 = vpop.f32.mrb[7].mxu1  ;;  %911 = vst [vmem:[%s2708_s20 + $0x60] sm:$0xff] %v770_v10  ;;  %v1881_v62 = vmul.f32 -1.442695, %v770_v10 }
 0x18a   : > { %1962 = vpow2.f32 %v1879_v1  ;;  %v2739_v13 = vadd.f32 %v771_v50, %v2383_v36  ;;  %v2742_v60 = vadd.f32 %v878_v12, %v2383_v36  ;;  %v1945_v31 = vpop.eup %1944  ;;  %913 = vst [vmem:[%s2708_s20 + $0x70] sm:$0xff] %v2736_v38  ;;  %v775_v54 = vpop.f32.mrb[8].mxu0 }
 0x18b   : > { %1964 = vpow2.f32 %v1878_v43  ;;  %v1947_v17 = vpop.eup %1946  ;;  %v1011_v0 = vadd.f32 1.0, %v1945_v31  ;;  %v2752_v36 = vadd.f32 %v775_v54, %v2392_v41  ;;  %v882_v9 = vpop.f32.mrb[8].mxu1 }
 0x18c   : > { %1966 = vpow2.f32 %v1880_v20  ;;  %912 = vst [vmem:[%s2708_s20 + $0x68] sm:$0xff] %v2739_v13  ;;  %914 = vst [vmem:[%s2708_s20 + $0x78] sm:$0xff] %v2742_v60  ;;  %v1949_v55 = vpop.eup %1948  ;;  %v1013_v5 = vadd.f32 1.0, %v1947_v17  ;;  %v777_v25 = vpop.f32.mrb[9].mxu0  ;;  %v2755_v61 = vadd.f32 %v882_v9, %v2392_v41 }
 0x18d   : > { %1968 = vpow2.f32 %v1881_v62  ;;  %v1951_v44 = vpop.eup %1950  ;;  %v1012_v52 = vadd.f32 1.0, %v1949_v55  ;;  %v2758_v42 = vadd.f32 %v777_v25, %v2392_v41  ;;  %v884_v63 = vpop.f32.mrb[9].mxu1  ;;  %915 = vst [vmem:[%s2708_s20 + $0x80] sm:$0xff] %v2752_v36 }
 0x18e   : > { %1970 = vrcp.f32 %v1011_v0  ;;  %v1953_v1 = vpop.eup %1952  ;;  %v1014_v43 = vadd.f32 1.0, %v1951_v44  ;;  %v2763_v20 = vadd.f32 %v884_v63, %v2392_v41  ;;  %917 = vst [vmem:[%s2708_s20 + $0x90] sm:$0xff] %v2755_v61  ;;  %v781_v10 = vpop.f32.mrb[10].mxu0 }
 0x18f   : > { %1972 = vrcp.f32 %v1013_v5  ;;  %v1955_v7 = vpop.eup %1954  ;;  %v1015_v47 = vadd.f32 1.0, %v1953_v1  ;;  %916 = vst [vmem:[%s2708_s20 + $0x88] sm:$0xff] %v2758_v42  ;;  %v2772_v31 = vadd.f32 %v781_v10, %v2390_v40  ;;  %v888_v62 = vpop.f32.mrb[10].mxu1  ;;  %v2823_v37 = vmul.f32 -1.442695, %v2758_v42 }
 0x190   : > { %1974 = vrcp.f32 %v1012_v52  ;;  %v1957_v50 = vpop.eup %1956  ;;  %v1017_v12 = vadd.f32 1.0, %v1955_v7  ;;  %918 = vst [vmem:[%s2708_s20 + $0x98] sm:$0xff] %v2763_v20  ;;  %v783_v41 = vpop.f32.mrb[11].mxu0  ;;  %v2775_v54 = vadd.f32 %v888_v62, %v2390_v40 }
 0x191   : > { %1976 = vrcp.f32 %v1014_v43  ;;  %v1959_v17 = vpop.eup %1958  ;;  %v1016_v0 = vadd.f32 1.0, %v1957_v50  ;;  %v2778_v55 = vadd.f32 %v783_v41, %v2390_v40  ;;  %v890_v5 = vpop.f32.mrb[11].mxu1  ;;  %919 = vst [vmem:[%s2708_s20 + $0xa0] sm:$0xff] %v2772_v31 }
 0x192   : > { %1978 = vrcp.f32 %v1015_v47  ;;  %v1018_v25 = vadd.f32 1.0, %v1959_v17  ;;  %v2783_v44 = vadd.f32 %v890_v5, %v2390_v40  ;;  %921 = vst [vmem:[%s2708_s20 + $0xb0] sm:$0xff] %v2775_v54  ;;  %v787_v1 = vpop.f32.mrb[12].mxu0 }
 0x193   : > { %v1961_v9 = vpop.eup %1960  ;;  %1980 = vrcp.f32 %v1017_v12  ;;  %920 = vst [vmem:[%s2708_s20 + $0xa8] sm:$0xff] %v2778_v55  ;;  %v2792_v47 = vadd.f32 %v787_v1, %v2401_v46  ;;  %v894_v10 = vpop.f32.mrb[12].mxu1  ;;  %v1882_v1 = vmul.f32 -1.442695, %v2739_v13 }
 0x194   : > { %v1963_v52 = vpop.eup %1962  ;;  %1982 = vrcp.f32 %v1016_v0  ;;  %v1019_v63 = vadd.f32 1.0, %v1961_v9  ;;  %922 = vst [vmem:[%s2708_s20 + $0xb8] sm:$0xff] %v2783_v44  ;;  %v789_v40 = vpop.f32.mrb[13].mxu0  ;;  %v2795_v62 = vadd.f32 %v894_v10, %v2401_v46  ;;  %v1883_v9 = vmul.f32 -1.442695, %v2736_v38 }
 0x195   : > { %v1965_v43 = vpop.eup %1964  ;;  %1984 = vrcp.f32 %v1018_v25  ;;  %v1021_v7 = vadd.f32 1.0, %v1963_v52  ;;  %v2798_v41 = vadd.f32 %v789_v40, %v2401_v46  ;;  %v896_v17 = vpop.f32.mrb[13].mxu1  ;;  %923 = vst [vmem:[%s2708_s20 + $0xc0] sm:$0x7] %v2792_v47  ;;  %v1884_v38 = vmul.f32 -1.442695, %v2742_v60 }
 0x196   : > { %v1967_v50 = vpop.eup %1966  ;;  %1986 = vrcp.f32 %v1019_v63  ;;  %v1020_v12 = vadd.f32 1.0, %v1965_v43  ;;  %v2804_v25 = vadd.f32 %v896_v17, %v2401_v46  ;;  %925 = vst [vmem:[%s2708_s20 + $0xd0] sm:$0x7] %v2795_v62  ;;  %v1553_v46 = vpop.permute.xlu1 %1552 }
 0x197   : > { %v1969_v0 = vpop.eup %1968  ;;  %1988 = vrcp.f32 %v1021_v7  ;;  %v1022_v5 = vadd.f32 1.0, %v1967_v50  ;;  %924 = vst [vmem:[%s2708_s20 + $0xc8] sm:$0x7] %v2798_v41  ;;  %v1885_v50 = vmul.f32 -1.442695, %v2752_v36 }
 0x198   : > { %v1971_v52 = vpop.eup %1970  ;;  %1990 = vrcp.f32 %v1020_v12  ;;  %v1023_v63 = vadd.f32 1.0, %v1969_v0  ;;  %926 = vst [vmem:[%s2708_s20 + $0xd8] sm:$0x7] %v2804_v25  ;;  %v2819_v0 = vmul.f32 -1.442695, %v2755_v61  ;;  %v1558_v61 = vpop.permute.xlu0 %1557 }
 0x199   : > { %v1973_v43 = vpop.eup %1972  ;;  %v1522_v7 = vmul.f32 %v1971_v52, %v2624_v53  ;;  %1992 = vrcp.f32 %v1022_v5 }
 0x19a   : > { %v1975_v10 = vpop.eup %1974  ;;  %v1524_v40 = vmul.f32 %v1973_v43, %v2624_v53  ;;  %1994 = vrcp.f32 %v1023_v63 }
 0x19b   : > { %v1977_v13 = vpop.eup %1976  ;;  %v1585_v12 = vadd.f32 %v1553_v46, %v1522_v7  ;;  %v1523_v17 = vmul.f32 %v1975_v10, %v2624_v53  ;;  %1996 = vpow2.f32 %v1883_v9 }
 0x19c   : > { %v1979_v5 = vpop.eup %1978  ;;  %v1587_v60 = vadd.f32 %v1553_v46, %v1524_v40  ;;  %v1525_v27 = vmul.f32 %v1977_v13, %v2624_v53  ;;  %1998 = vpow2.f32 %v1882_v1 }
 0x19d   : > { %v1981_v63 = vpop.eup %1980  ;;  %v1613_v39 = vmul.f32 %v1971_v52, %v1585_v12  ;;  %v1586_v36 = vadd.f32 %v1553_v46, %v1523_v17  ;;  %v1526_v35 = vmul.f32 %v1979_v5, %v2622_v16  ;;  %2000 = vpow2.f32 %v1884_v38 }
 0x19e   : > { %v1983_v7 = vpop.eup %1982  ;;  %v1615_v53 = vmul.f32 %v1973_v43, %v1587_v60  ;;  %v1588_v9 = vadd.f32 %v1553_v46, %v1525_v27  ;;  %v1528_v42 = vmul.f32 %v1981_v63, %v2622_v16  ;;  %2002 = vpow2.f32 %v1885_v50 }
 0x19f   : > { %v1985_v1 = vpop.eup %1984  ;;  %v1641_v52 = vadd.f32 %v1613_v39, %v2586_v48  ;;  %v1614_v40 = vmul.f32 %v1975_v10, %v1586_v36  ;;  %v1589_v38 = vadd.f32 %v1558_v61, %v1526_v35  ;;  %v1527_v12 = vmul.f32 %v1983_v7, %v2622_v16  ;;  %v1563_v39 = vpop.permute.xlu1 %1562 }
 0x1a0   : > { %v1987_v17 = vpop.eup %1986  ;;  %v1643_v59 = vadd.f32 %v1615_v53, %v2592_v45  ;;  %v1616_v49 = vmul.f32 %v1977_v13, %v1588_v9  ;;  %v1591_v15 = vadd.f32 %v1558_v61, %v1528_v42  ;;  %v1529_v43 = vmul.f32 %v1985_v1, %v2622_v16 }
 0x1a1   : > { %v1989_v27 = vpop.eup %1988  ;;  %1669 = vst [vmem:[%s2831_s27] sm:$0xff] %v1641_v52  ;;  %v1642_v46 = vadd.f32 %v1614_v40, %v2588_v28  ;;  %v1617_v50 = vmul.f32 %v1979_v5, %v1589_v38  ;;  %v1590_v60 = vadd.f32 %v1558_v61, %v1527_v12  ;;  %v1530_v48 = vmul.f32 %v1987_v17, %v2634_v29  ;;  %v2853_v38 = vpop.permute.xlu0 %1567 }
 0x1a2   : > { %v1991_v35 = vpop.eup %1990  ;;  %1671 = vst [vmem:[%s2831_s27 + $0x10] sm:$0xff] %v1643_v59  ;;  %v1644_v10 = vadd.f32 %v1616_v49, %v2594_v3  ;;  %v1619_v45 = vmul.f32 %v1981_v63, %v1591_v15  ;;  %v1592_v13 = vadd.f32 %v1558_v61, %v1529_v43  ;;  %v1532_v36 = vmul.f32 %v1989_v27, %v2634_v29 }
 0x1a3   : > { %v1993_v16 = vpop.eup %1992  ;;  %1670 = vst [vmem:[%s2831_s27 + $0x8] sm:$0xff] %v1642_v46  ;;  %v1645_v53 = vadd.f32 %v1617_v50, %v2617_v33  ;;  %v1618_v28 = vmul.f32 %v1983_v7, %v1590_v60  ;;  %v1593_v5 = vadd.f32 %v1563_v39, %v1530_v48  ;;  %v1531_v9 = vmul.f32 %v1991_v35, %v2634_v29 }
 0x1a4   : > { %v1995_v42 = vpop.eup %1994  ;;  %1672 = vst [vmem:[%s2831_s27 + $0x18] sm:$0xff] %v1644_v10  ;;  %v1647_v59 = vadd.f32 %v1619_v45, %v2627_v56  ;;  %v1620_v52 = vmul.f32 %v1985_v1, %v1592_v13  ;;  %v1595_v3 = vadd.f32 %v1563_v39, %v1532_v36  ;;  %v1533_v49 = vmul.f32 %v1993_v16, %v2634_v29 }
 0x1a5   : > { %v1997_v15 = vpop.eup %1996  ;;  %1673 = vst [vmem:[%s2831_s27 + $0x20] sm:$0xff] %v1645_v53  ;;  %v1646_v63 = vadd.f32 %v1618_v28, %v2620_v26  ;;  %v1621_v61 = vmul.f32 %v1987_v17, %v1593_v5  ;;  %v1594_v33 = vadd.f32 %v1563_v39, %v1531_v9  ;;  %v1534_v7 = vmul.f32 %v1995_v42, %v2632_v57  ;;  %v1573_v9 = vpop.permute.xlu1 %1572 }
 0x1a6   : > { %v1999_v40 = vpop.eup %1998  ;;  %1675 = vst [vmem:[%s2831_s27 + $0x30] sm:$0xff] %v1647_v59  ;;  %v1648_v56 = vadd.f32 %v1620_v52, %v2630_v6  ;;  %v1623_v1 = vmul.f32 %v1989_v27, %v1595_v3  ;;  %v1596_v12 = vadd.f32 %v1563_v39, %v1533_v49  ;;  %v1025_v43 = vadd.f32 1.0, %v1997_v15 }
 0x1a7   : > { %v2001_v29 = vpop.eup %2000  ;;  %1674 = vst [vmem:[%s2831_s27 + $0x28] sm:$0xff] %v1646_v63  ;;  %v1649_v26 = vadd.f32 %v1621_v61, %v2606_v24  ;;  %v1622_v17 = vmul.f32 %v1991_v35, %v1594_v33  ;;  %v1597_v46 = vadd.f32 %v2853_v38, %v1534_v7  ;;  %v1024_v50 = vadd.f32 1.0, %v1999_v40 }
 0x1a8   : > { %v2003_v60 = vpop.eup %2002  ;;  %1676 = vst [vmem:[%s2831_s27 + $0x38] sm:$0xff] %v1648_v56  ;;  %v1651_v48 = vadd.f32 %v1623_v1, %v2612_v8  ;;  %v1624_v10 = vmul.f32 %v1993_v16, %v1596_v12  ;;  %2004 = vrcp.f32 %v1025_v43  ;;  %v1026_v6 = vadd.f32 1.0, %v2001_v29 }
 0x1a9   : > { %1677 = vst [vmem:[%s2831_s27 + $0x40] sm:$0xff] %v1649_v26  ;;  %v1650_v27 = vadd.f32 %v1622_v17, %v2608_v14  ;;  %v1625_v39 = vmul.f32 %v1995_v42, %v1597_v46  ;;  %2006 = vrcp.f32 %v1024_v50  ;;  %v1027_v24 = vadd.f32 1.0, %v2003_v60 }
 0x1aa   : > { %1679 = vst [vmem:[%s2831_s27 + $0x50] sm:$0xff] %v1651_v48  ;;  %v1652_v35 = vadd.f32 %v1624_v10, %v2614_v32  ;;  %2008 = vrcp.f32 %v1026_v6  ;;  %v1888_v45 = vmul.f32 -1.442695, %v2763_v20  ;;  %v1889_v13 = vmul.f32 -1.442695, %v2772_v31 }
 0x1ab   : > { %1678 = vst [vmem:[%s2831_s27 + $0x48] sm:$0xff] %v1650_v27  ;;  %v1653_v8 = vadd.f32 %v1625_v39, %v2647_v23  ;;  %2010 = vrcp.f32 %v1027_v24  ;;  %v1891_v14 = vmul.f32 -1.442695, %v2775_v54  ;;  %v1890_v36 = vmul.f32 -1.442695, %v2778_v55 }
 0x1ac   : > { %1680 = vst [vmem:[%s2831_s27 + $0x58] sm:$0xff] %v1652_v35  ;;  %2012 = vpow2.f32 %v2819_v0  ;;  %v1892_v32 = vmul.f32 -1.442695, %v2783_v44  ;;  %v1893_v20 = vmul.f32 -1.442695, %v2792_v47 }
 0x1ad   : > { %1681 = vst [vmem:[%s2831_s27 + $0x60] sm:$0xff] %v1653_v8  ;;  %2014 = vpow2.f32 %v2823_v37  ;;  %v1895_v23 = vmul.f32 -1.442695, %v2795_v62  ;;  %v1894_v31 = vmul.f32 -1.442695, %v2798_v41 }
 0x1ae   : > { %2016 = vpow2.f32 %v1888_v45  ;;  %v1896_v54 = vmul.f32 -1.442695, %v2804_v25 }
 0x1af   : > { %2018 = vpow2.f32 %v1889_v13 }
 0x1b0   : > { %2020 = vpow2.f32 %v1891_v14 }
 0x1b1   : > { %2022 = vpow2.f32 %v1890_v36 }
 0x1b2   : > { %v2005_v0 = vpop.eup %2004  ;;  %2024 = vpow2.f32 %v1892_v32 }
 0x1b3   : > { %v2007_v16 = vpop.eup %2006  ;;  %v1536_v37 = vmul.f32 %v2005_v0, %v2632_v57  ;;  %2026 = vpow2.f32 %v1893_v20 }
 0x1b4   : > { %v2009_v55 = vpop.eup %2008  ;;  %v1535_v44 = vmul.f32 %v2007_v16, %v2632_v57  ;;  %2028 = vpow2.f32 %v1895_v23 }
 0x1b5   : > { %v2011_v53 = vpop.eup %2010  ;;  %v1599_v47 = vadd.f32 %v2853_v38, %v1536_v37  ;;  %v1537_v62 = vmul.f32 %v2009_v55, %v2632_v57  ;;  %2030 = vpow2.f32 %v1894_v31  ;;  %v1578_v31 = vpop.permute.xlu0 %1577 }
 0x1b6   : > { %v2013_v28 = vpop.eup %2012  ;;  %v1598_v41 = vadd.f32 %v2853_v38, %v1535_v44  ;;  %v1538_v5 = vmul.f32 %v2011_v53, %v2638_v58  ;;  %2032 = vpow2.f32 %v1896_v54 }
 0x1b7   : > { %v2015_v25 = vpop.eup %2014  ;;  %v1627_v42 = vmul.f32 %v2005_v0, %v1599_v47  ;;  %v1600_v59 = vadd.f32 %v2853_v38, %v1537_v62  ;;  %v1029_v52 = vadd.f32 1.0, %v2013_v28 }
 0x1b8   : > { %v2017_v3 = vpop.eup %2016  ;;  %v1626_v49 = vmul.f32 %v2007_v16, %v1598_v41  ;;  %v1601_v15 = vadd.f32 %v1573_v9, %v1538_v5  ;;  %v1028_v63 = vadd.f32 1.0, %v2015_v25 }
 0x1b9   : > { %v2019_v61 = vpop.eup %2018  ;;  %v1655_v57 = vadd.f32 %v1627_v42, %v2653_v22  ;;  %v1628_v33 = vmul.f32 %v2009_v55, %v1600_v59  ;;  %2034 = vrcp.f32 %v1029_v52  ;;  %v1030_v7 = vadd.f32 1.0, %v2017_v3  ;;  %v1583_v3 = vpop.permute.xlu1 %1582 }
 0x1ba   : > { %v2021_v40 = vpop.eup %2020  ;;  %v1654_v56 = vadd.f32 %v1626_v49, %v2650_v2  ;;  %v1629_v1 = vmul.f32 %v2011_v53, %v1601_v15  ;;  %2036 = vrcp.f32 %v1028_v63  ;;  %v1031_v38 = vadd.f32 1.0, %v2019_v61 }
 0x1bb   : > { %v2023_v12 = vpop.eup %2022  ;;  %1683 = vst [vmem:[%s2831_s27 + $0x70] sm:$0xff] %v1655_v57  ;;  %v1656_v43 = vadd.f32 %v1628_v33, %v2656_v4  ;;  %2038 = vrcp.f32 %v1030_v7  ;;  %v1033_v29 = vadd.f32 1.0, %v2021_v40  ;;  %v2958_v7 = vld [vmem:[#allocation3_spill] sm:$0xff] }
 0x1bc   : > { %v2025_v26 = vpop.eup %2024  ;;  %1682 = vst [vmem:[%s2831_s27 + $0x68] sm:$0xff] %v1654_v56  ;;  %v1657_v22 = vadd.f32 %v1629_v1, %v2679_v21  ;;  %2040 = vrcp.f32 %v1031_v38  ;;  %v1032_v17 = vadd.f32 1.0, %v2023_v12  ;;  %v2959_v38 = vld [vmem:[#allocation2_spill] sm:$0xff] }
 0x1bd   : > { %v2027_v46 = vpop.eup %2026  ;;  %1684 = vst [vmem:[%s2831_s27 + $0x78] sm:$0xff] %v1656_v43  ;;  %2042 = vrcp.f32 %v1033_v29  ;;  %v1034_v2 = vadd.f32 1.0, %v2025_v26  ;;  %v2960_v29 = vld [vmem:[#allocation4_spill] sm:$0xff] }
 0x1be   : > { %v2029_v50 = vpop.eup %2028  ;;  %1685 = vst [vmem:[%s2831_s27 + $0x80] sm:$0xff] %v1657_v22  ;;  %2044 = vrcp.f32 %v1032_v17  ;;  %v1035_v60 = vadd.f32 1.0, %v2027_v46  ;;  %v2961_v46 = vld [vmem:[#allocation5_spill] sm:$0xff] }
 0x1bf   : > { %v2031_v48 = vpop.eup %2030  ;;  %2046 = vrcp.f32 %v1034_v2  ;;  %v1037_v10 = vadd.f32 1.0, %v2029_v50 }
 0x1c0   : > { %v2033_v4 = vpop.eup %2032  ;;  %2048 = vrcp.f32 %v1035_v60  ;;  %v1036_v6 = vadd.f32 1.0, %v2031_v48  ;;  %v2962_v60 = vld [vmem:[#allocation7_spill] sm:$0xff] }
 0x1c1   : > { %2050 = vrcp.f32 %v1037_v10  ;;  %v1038_v27 = vadd.f32 1.0, %v2033_v4  ;;  %v2963_v10 = vld [vmem:[#allocation6_spill] sm:$0xff] }
 0x1c2   : > { %2052 = vrcp.f32 %v1036_v6  ;;  %v2964_v6 = vld [vmem:[#allocation8_spill] sm:$0xff] }
 0x1c3   : > { %v2035_v21 = vpop.eup %2034  ;;  %2054 = vrcp.f32 %v1038_v27 }
 0x1c4   : > { %v2037_v39 = vpop.eup %2036  ;;  %v1540_v24 = vmul.f32 %v2035_v21, %v2638_v58 }
 0x1c5   : > { %v2039_v35 = vpop.eup %2038  ;;  %v1539_v45 = vmul.f32 %v2037_v39, %v2638_v58 }
 0x1c6   : > { %v2041_v8 = vpop.eup %2040  ;;  %v1603_v13 = vadd.f32 %v1573_v9, %v1540_v24  ;;  %v1541_v14 = vmul.f32 %v2039_v35, %v2638_v58 }
 0x1c7   : > { %v2043_v36 = vpop.eup %2042  ;;  %v1602_v32 = vadd.f32 %v1573_v9, %v1539_v45  ;;  %v1542_v20 = vmul.f32 %v2041_v8, %v2636_v30 }
 0x1c8   : > { %v2045_v23 = vpop.eup %2044  ;;  %v1631_v0 = vmul.f32 %v2035_v21, %v1603_v13  ;;  %v1604_v54 = vadd.f32 %v1573_v9, %v1541_v14  ;;  %v1544_v16 = vmul.f32 %v2043_v36, %v2636_v30 }
 0x1c9   : > { %v2047_v37 = vpop.eup %2046  ;;  %v1630_v55 = vmul.f32 %v2037_v39, %v1602_v32  ;;  %v1605_v44 = vadd.f32 %v1578_v31, %v1542_v20  ;;  %v1543_v53 = vmul.f32 %v2045_v23, %v2636_v30 }
 0x1ca   : > { %v2049_v47 = vpop.eup %2048  ;;  %v1659_v62 = vadd.f32 %v1631_v0, %v2685_v18  ;;  %v1632_v58 = vmul.f32 %v2039_v35, %v1604_v54  ;;  %v1607_v28 = vadd.f32 %v1578_v31, %v1544_v16  ;;  %v1545_v41 = vmul.f32 %v2047_v37, %v2636_v30 }
 0x1cb   : > { %v2051_v5 = vpop.eup %2050  ;;  %v1658_v25 = vadd.f32 %v1630_v55, %v2682_v11  ;;  %v1633_v9 = vmul.f32 %v2041_v8, %v1605_v44  ;;  %v1606_v42 = vadd.f32 %v1578_v31, %v1543_v53  ;;  %v1546_v59 = vmul.f32 %v2049_v47, %v2640_v34 }
 0x1cc   : > { %v2053_v52 = vpop.eup %2052  ;;  %1687 = vst [vmem:[%s2831_s27 + $0x90] sm:$0xff] %v1659_v62  ;;  %v1660_v49 = vadd.f32 %v1632_v58, %v2688_v19  ;;  %v1635_v18 = vmul.f32 %v2043_v36, %v1607_v28  ;;  %v1608_v15 = vadd.f32 %v1578_v31, %v1545_v41  ;;  %v1548_v63 = vmul.f32 %v2051_v5, %v2640_v34 }
 0x1cd   : > { %v2055_v30 = vpop.eup %2054  ;;  %1686 = vst [vmem:[%s2831_s27 + $0x88] sm:$0xff] %v1658_v25  ;;  %v1661_v11 = vadd.f32 %v1633_v9, %v2667_v51  ;;  %v1634_v61 = vmul.f32 %v2045_v23, %v1606_v42  ;;  %v1609_v57 = vadd.f32 %v1583_v3, %v1546_v59  ;;  %v1547_v33 = vmul.f32 %v2053_v52, %v2640_v34 }
 0x1ce   : > { %1688 = vst [vmem:[%s2831_s27 + $0x98] sm:$0xff] %v1660_v49  ;;  %v1663_v40 = vadd.f32 %v1635_v18, %v2958_v7  ;;  %v1636_v56 = vmul.f32 %v2047_v37, %v1608_v15  ;;  %v1611_v19 = vadd.f32 %v1583_v3, %v1548_v63  ;;  %v1549_v1 = vmul.f32 %v2055_v30, %v2640_v34 }
 0x1cf   : > { %1689 = vst [vmem:[%s2831_s27 + $0xa0] sm:$0xff] %v1661_v11  ;;  %v1662_v12 = vadd.f32 %v1634_v61, %v2959_v38  ;;  %v1637_v43 = vmul.f32 %v2049_v47, %v1609_v57  ;;  %v1610_v51 = vadd.f32 %v1583_v3, %v1547_v33 }
 0x1d0   : > { %1691 = vst [vmem:[%s2831_s27 + $0xb0] sm:$0xff] %v1663_v40  ;;  %v1664_v26 = vadd.f32 %v1636_v56, %v2960_v29  ;;  %v1639_v22 = vmul.f32 %v2051_v5, %v1611_v19  ;;  %v1612_v17 = vadd.f32 %v1583_v3, %v1549_v1 }
 0x1d1   : > { %1690 = vst [vmem:[%s2831_s27 + $0xa8] sm:$0xff] %v1662_v12  ;;  %v1665_v2 = vadd.f32 %v1637_v43, %v2961_v46  ;;  %v1638_v50 = vmul.f32 %v2053_v52, %v1610_v51 }
 0x1d2   : > { %1692 = vst [vmem:[%s2831_s27 + $0xb8] sm:$0xff] %v1664_v26  ;;  %v1667_v34 = vadd.f32 %v1639_v22, %v2962_v60  ;;  %v1640_v48 = vmul.f32 %v2055_v30, %v1612_v17 }
 0x1d3   : > { %1693 = vst [vmem:[%s2831_s27 + $0xc0] sm:$0x7] %v1665_v2  ;;  %v1666_v4 = vadd.f32 %v1638_v50, %v2963_v10 }
 0x1d4   : > { %1695 = vst [vmem:[%s2831_s27 + $0xd0] sm:$0x7] %v1667_v34  ;;  %v1668_v27 = vadd.f32 %v1640_v48, %v2964_v6 }
 0x1d5   : > { %1694 = vst [vmem:[%s2831_s27 + $0xc8] sm:$0x7] %v1666_v4 }
 0x1d6   : > { %1696 = vst [vmem:[%s2831_s27 + $0xd8] sm:$0x7] %v1668_v27 }
 0x1d7 PF: > { %s23_s23 = sadd.s32 1, %s2078_s23   ;;  %s2965_s21 = smov %s2074_s22 }
 0x1d8   : > { %p20_p5 = scmp.ge.s32.totalorder %s23_s23, 4   ;;  %s2966_s22 = smov %s2968_s24 }
 0x1da   :  { %22 = sbr.rel (!%p20_p5) target bundleno = 2 (0x2), region = 109 }

</bundles_post_ra>
